<compile_context>
chip_gen: v7x
topology: tpu7x:2x2x1
jax: 0.10.0
libtpu: 0.0.40
codegen_flags: <defaults>
</compile_context>

<pallas_src>
import functools

import jax
import jax.numpy as jnp
from jax.experimental import pallas as pl
from jax.experimental.pallas import tpu as pltpu


def _default_batch_block(N, Cin, Cout, L):
    """Pick the per-grid-step batch size B."""
    def valid(b):
        if N % b:
            return False
        g = N // b
        # Blocks must be (8,128)-tileable unless they span the whole array.
        return g == 1 or ((Cin * b) % 8 == 0 and (Cout * b) % 8 == 0)

    candidates = [b for b in range(1, N + 1) if valid(b)]  # b = N always valid
    bytes_per_b = (Cin + Cout) * L * 4

    def score(b):
        steps = N // b
        return (
            2 * bytes_per_b * b <= 4 * 1024 * 1024,  # double-buffered blocks stay small
            (Cin * b) % 8 == 0,                      # slabs fill all 8 sublanes
            steps >= 2,                              # pipelining + v7x megacore
            -abs(steps - 4),                         # a handful of steps is plenty
            b,                                       # amortize per-step overhead
        )

    return max(candidates, key=score)


def _conv_channelmajor(x_block, wcol_ref, bias_ref, mask_ref, *,
                       Cin, Cout, B, K, W, L):
    """Direct KxK 'same' conv on a channel-major (Cin*B, L) slab.

    x_block  : (Cin*B, L) f32, row ci*B + n  (spatial flattened on lanes).
    wcol_ref : VMEM (K*K*Cout, Cin*B, 1) per-tap sublane weight columns.
    bias_ref : SMEM (Cout,).
    mask_ref : VMEM (K*K, 1, L) 0/1 tap-validity masks (zero padding).
    Returns  : list[Cout] of (B, L) f32 outputs (bias added, no activation).
    """
    pad = K // 2
    accs = [None] * Cout
    for dy in range(K):
        for dx in range(K):
            t = dy * K + dx
            s = (dy - pad) * W + (dx - pad)          # flat lane shift for this tap
            if s == 0:
                slab = x_block                        # center tap: all lanes valid
            else:
                # shifted[i] = x[(i + s) mod L] per row; out-of-image lanes -> 0.
                slab = pltpu.roll(x_block, (-s) % L, axis=1) * mask_ref[t]
            # One fused mul-add per output channel on the full 8-sublane slab.
            for co in range(Cout):
                contrib = slab * wcol_ref[t * Cout + co]
                accs[co] = contrib if accs[co] is None else accs[co] + contrib
    # Reduce over input channels: contiguous sublane-slice adds.
    outs = []
    for co in range(Cout):
        a = accs[co]
        r = a[0:B, :]
        for ci in range(1, Cin):
            r = r + a[ci * B:(ci + 1) * B, :]
        outs.append(r + bias_ref[co])
    return outs


def _residual_block_kernel(x_ref, wcol1_ref, b1_ref, wcol2_ref, b2_ref, mask_ref,
                           out_ref, h1_ref, *, B, Cin, Cout, K, W, L):
    """One batch block per grid step.

    x_ref   : (Cin*B, L)          VMEM  channel-major input slab
    wcol*   : (K*K*Cout, C*B, 1)  VMEM  per-tap weight columns (resident)
    b*      : (Cout,)             SMEM  biases
    mask_ref: (K*K, 1, L)         VMEM  tap-validity masks (resident)
    out_ref : (Cout*B, L)         VMEM  channel-major output slab
    h1_ref  : (Cout*B, L)         VMEM  scratch for the conv1 activation
    """
    x = x_ref[...].astype(jnp.float32)                    # (Cin*B, L)

    # ---- conv1 + bias + ReLU, staged through VMEM scratch ----
    h1 = _conv_channelmajor(x, wcol1_ref, b1_ref, mask_ref,
                            Cin=Cin, Cout=Cout, B=B, K=K, W=W, L=L)
    for co in range(Cout):
        h1_ref[co * B:(co + 1) * B, :] = jnp.maximum(h1[co], 0.0)

    # ---- conv2 + bias + residual add ----
    h2 = _conv_channelmajor(h1_ref[...], wcol2_ref, b2_ref, mask_ref,
                            Cin=Cout, Cout=Cout, B=B, K=K, W=W, L=L)
    for co in range(Cout):
        # Residual add requires in_channels == out_channels (as in PyTorch).
        out_ref[co * B:(co + 1) * B, :] = (
            h2[co] + x[co * B:(co + 1) * B, :]).astype(out_ref.dtype)


def residual_block(x, w1, b1, w2, b2, kernel_size, *, batch_block=None):
    """x: (N, Cin, H, W) f32; w*: (Cout, Cin, K, K) OIHW; b*: (Cout,)."""
    N, Cin, H, W = x.shape
    K = kernel_size
    Cout = w1.shape[0]
    assert Cin == Cout, "residual add requires in_channels == out_channels"
    L = H * W

    B = _default_batch_block(N, Cin, Cout, L) if batch_block is None else batch_block
    assert N % B == 0
    G = N // B
    assert G == 1 or ((Cin * B) % 8 == 0 and (Cout * B) % 8 == 0), (
        "block rows must fill whole sublane tiles when the grid has >1 step")

    # Channel-major-within-block, fully 2-D layout: rows = (step, ci, n_local),
    # lanes = flattened spatial.  The transpose is wrapper-side layout plumbing.
    xf = (x.reshape(G, B, Cin, L).transpose(0, 2, 1, 3)
            .reshape(G * Cin * B, L))

    # Per-tap sublane-broadcast weight columns: row ci*B + n -> w[co, ci, dy, dx].
    def weight_cols(w, cin):
        wt = jnp.transpose(w, (2, 3, 0, 1)).reshape(K * K, Cout, cin)
        return (jnp.repeat(wt, B, axis=2)
                  .reshape(K * K * Cout, cin * B, 1).astype(jnp.float32))
    wcol1 = weight_cols(w1, Cin)
    wcol2 = weight_cols(w2, Cout)

    # Per-tap zero-padding validity masks on the flattened spatial (lane) axis.
    pad = K // 2
    pos = jnp.arange(L, dtype=jnp.int32)
    row, col = pos // W, pos % W
    mask_list = []
    for dy in range(K):
        for dx in range(K):
            sy, sx = dy - pad, dx - pad
            mask_list.append(((col + sx >= 0) & (col + sx < W) &
                              (row + sy >= 0) & (row + sy < H)).astype(jnp.float32))
    masks = jnp.stack(mask_list, axis=0).reshape(K * K, 1, L)

    kernel = functools.partial(_residual_block_kernel,
                               B=B, Cin=Cin, Cout=Cout, K=K, W=W, L=L)
    smem_spec = pl.BlockSpec(memory_space=pltpu.MemorySpace.SMEM)

    def full_spec(shape):
        return pl.BlockSpec(shape, lambda g: (0,) * len(shape))

    outf = pl.pallas_call(
        kernel,
        out_shape=jax.ShapeDtypeStruct((G * Cout * B, L), x.dtype),
        grid_spec=pltpu.PrefetchScalarGridSpec(
            num_scalar_prefetch=0,
            grid=(G,),
            in_specs=[
                pl.BlockSpec((Cin * B, L), lambda g: (g, 0)),   # x slab
                full_spec((K * K * Cout, Cin * B, 1)),          # conv1 weight cols
                smem_spec,                                      # b1
                full_spec((K * K * Cout, Cout * B, 1)),         # conv2 weight cols
                smem_spec,                                      # b2
                full_spec((K * K, 1, L)),                       # tap masks
            ],
            out_specs=pl.BlockSpec((Cout * B, L), lambda g: (g, 0)),
            scratch_shapes=[pltpu.VMEM((Cout * B, L), jnp.float32)],
        ),
        compiler_params=pltpu.CompilerParams(
            dimension_semantics=("parallel",),          # shards steps across v7x TCs
            vmem_limit_bytes=32 * 1024 * 1024),
    )(xf, wcol1, b1.astype(jnp.float32), wcol2, b2.astype(jnp.float32), masks)

    return (outf.reshape(G, Cout, B, L).transpose(0, 2, 1, 3)
                .reshape(N, Cout, H, W))


if __name__ == "__main__":
    key = jax.random.PRNGKey(0)
    N, C, H, W, K = 2, 4, 16, 16, 3   # in_channels == out_channels == 4
    k_x, k_w1, k_b1, k_w2, k_b2 = jax.random.split(key, 5)

    x = jax.random.normal(k_x, (N, C, H, W), jnp.float32)

    # Deterministic PyTorch-style init: U(-1/sqrt(fan_in), 1/sqrt(fan_in)).
    fan_in = C * K * K
    bound = 1.0 / float(jnp.sqrt(fan_in))
    w1 = jax.random.uniform(k_w1, (C, C, K, K), jnp.float32, -bound, bound)
    b1 = jax.random.uniform(k_b1, (C,), jnp.float32, -bound, bound)
    w2 = jax.random.uniform(k_w2, (C, C, K, K), jnp.float32, -bound, bound)
    b2 = jax.random.uniform(k_b2, (C,), jnp.float32, -bound, bound)

    out = jax.block_until_ready(residual_block(x, w1, b1, w2, b2, K))

    # Pure-JAX reference for correctness.
    dn = ("NCHW", "OIHW", "NCHW")
    pad = K // 2
    h = jax.lax.conv_general_dilated(x, w1, (1, 1), [(pad, pad), (pad, pad)],
                                     dimension_numbers=dn)
    h = jnp.maximum(h + b1[None, :, None, None], 0.0)
    ref = jax.lax.conv_general_dilated(h, w2, (1, 1), [(pad, pad), (pad, pad)],
                                       dimension_numbers=dn)
    ref = ref + b2[None, :, None, None] + x

    assert jnp.allclose(out, ref, atol=1e-4, rtol=1e-4), (
        float(jnp.max(jnp.abs(out - ref))))
    print("KERNEL_OK")
</pallas_src>

<mosaic_0001>
module attributes {stable_mosaic.version = 11 : i64} {
  func.func @_residual_block_kernel(%arg0: i32, %arg1: memref<8x256xf32, #tpu.memory_space<vmem>>, %arg2: memref<36x8x1xf32, #tpu.memory_space<vmem>>, %arg3: memref<4xf32, #tpu.memory_space<smem>>, %arg4: memref<36x8x1xf32, #tpu.memory_space<vmem>>, %arg5: memref<4xf32, #tpu.memory_space<smem>>, %arg6: memref<9x1x256xf32, #tpu.memory_space<vmem>>, %arg7: memref<8x256xf32, #tpu.memory_space<vmem>>, %arg8: memref<8x256xf32, #tpu.memory_space<vmem>>) attributes {dimension_semantics = [#tpu.dimension_semantics<parallel>], iteration_bounds = array<i64: 1>, scalar_prefetch = 0 : i64, scratch_operands = 1 : i64, tpu.core_type = #tpu.core_type<tc>, window_params = [{transform_indices = @transform_0, window_bounds = array<i64: 8, 256>}, {pipeline_mode = #tpu.pipeline_mode<synchronous>, transform_indices = @transform_1, window_bounds = array<i64: 36, 8, 1>}, {transform_indices = @transform_2, window_bounds = array<i64: 4>}, {pipeline_mode = #tpu.pipeline_mode<synchronous>, transform_indices = @transform_3, window_bounds = array<i64: 36, 8, 1>}, {transform_indices = @transform_4, window_bounds = array<i64: 4>}, {pipeline_mode = #tpu.pipeline_mode<synchronous>, transform_indices = @transform_5, window_bounds = array<i64: 9, 1, 256>}, {transform_indices = @transform_6, window_bounds = array<i64: 8, 256>}]} {
    %c0 = arith.constant 0 : index
    %c0_0 = arith.constant 0 : index
    %0 = vector.load %arg1[%c0, %c0_0] : memref<8x256xf32, #tpu.memory_space<vmem>>, vector<8x256xf32>
    %c17_i32 = arith.constant 17 : i32
    %1 = tpu.dynamic_rotate %0 by %c17_i32 dim 1 : vector<8x256xf32>, i32 -> vector<8x256xf32>
    %c0_1 = arith.constant 0 : index
    %c0_2 = arith.constant 0 : index
    %c0_3 = arith.constant 0 : index
    %2 = vector.load %arg6[%c0_1, %c0_2, %c0_3] : memref<9x1x256xf32, #tpu.memory_space<vmem>>, vector<1x1x256xf32>
    %3 = vector.shape_cast %2 : vector<1x1x256xf32> to vector<1x256xf32>
    %4 = vector.broadcast %3 : vector<1x256xf32> to vector<8x256xf32>
    %5 = arith.mulf %1, %4 : vector<8x256xf32>
    %c0_4 = arith.constant 0 : index
    %c0_5 = arith.constant 0 : index
    %c0_6 = arith.constant 0 : index
    %6 = vector.load %arg2[%c0_4, %c0_5, %c0_6] : memref<36x8x1xf32, #tpu.memory_space<vmem>>, vector<1x8x1xf32>
    %7 = vector.shape_cast %6 : vector<1x8x1xf32> to vector<8x1xf32>
    %8 = vector.broadcast %7 : vector<8x1xf32> to vector<8x256xf32>
    %9 = arith.mulf %5, %8 : vector<8x256xf32>
    %c1 = arith.constant 1 : index
    %c0_7 = arith.constant 0 : index
    %c0_8 = arith.constant 0 : index
    %10 = vector.load %arg2[%c1, %c0_7, %c0_8] : memref<36x8x1xf32, #tpu.memory_space<vmem>>, vector<1x8x1xf32>
    %11 = vector.shape_cast %10 : vector<1x8x1xf32> to vector<8x1xf32>
    %12 = vector.broadcast %11 : vector<8x1xf32> to vector<8x256xf32>
    %13 = arith.mulf %5, %12 : vector<8x256xf32>
    %c2 = arith.constant 2 : index
    %c0_9 = arith.constant 0 : index
    %c0_10 = arith.constant 0 : index
    %14 = vector.load %arg2[%c2, %c0_9, %c0_10] : memref<36x8x1xf32, #tpu.memory_space<vmem>>, vector<1x8x1xf32>
    %15 = vector.shape_cast %14 : vector<1x8x1xf32> to vector<8x1xf32>
    %16 = vector.broadcast %15 : vector<8x1xf32> to vector<8x256xf32>
    %17 = arith.mulf %5, %16 : vector<8x256xf32>
    %c3 = arith.constant 3 : index
    %c0_11 = arith.constant 0 : index
    %c0_12 = arith.constant 0 : index
    %18 = vector.load %arg2[%c3, %c0_11, %c0_12] : memref<36x8x1xf32, #tpu.memory_space<vmem>>, vector<1x8x1xf32>
    %19 = vector.shape_cast %18 : vector<1x8x1xf32> to vector<8x1xf32>
    %20 = vector.broadcast %19 : vector<8x1xf32> to vector<8x256xf32>
    %21 = arith.mulf %5, %20 : vector<8x256xf32>
    %c16_i32 = arith.constant 16 : i32
    %22 = tpu.dynamic_rotate %0 by %c16_i32 dim 1 : vector<8x256xf32>, i32 -> vector<8x256xf32>
    %c1_13 = arith.constant 1 : index
    %c0_14 = arith.constant 0 : index
    %c0_15 = arith.constant 0 : index
    %23 = vector.load %arg6[%c1_13, %c0_14, %c0_15] : memref<9x1x256xf32, #tpu.memory_space<vmem>>, vector<1x1x256xf32>
    %24 = vector.shape_cast %23 : vector<1x1x256xf32> to vector<1x256xf32>
    %25 = vector.broadcast %24 : vector<1x256xf32> to vector<8x256xf32>
    %26 = arith.mulf %22, %25 : vector<8x256xf32>
    %c4 = arith.constant 4 : index
    %c0_16 = arith.constant 0 : index
    %c0_17 = arith.constant 0 : index
    %27 = vector.load %arg2[%c4, %c0_16, %c0_17] : memref<36x8x1xf32, #tpu.memory_space<vmem>>, vector<1x8x1xf32>
    %28 = vector.shape_cast %27 : vector<1x8x1xf32> to vector<8x1xf32>
    %29 = vector.broadcast %28 : vector<8x1xf32> to vector<8x256xf32>
    %30 = arith.mulf %26, %29 : vector<8x256xf32>
    %31 = arith.addf %9, %30 : vector<8x256xf32>
    %c5 = arith.constant 5 : index
    %c0_18 = arith.constant 0 : index
    %c0_19 = arith.constant 0 : index
    %32 = vector.load %arg2[%c5, %c0_18, %c0_19] : memref<36x8x1xf32, #tpu.memory_space<vmem>>, vector<1x8x1xf32>
    %33 = vector.shape_cast %32 : vector<1x8x1xf32> to vector<8x1xf32>
    %34 = vector.broadcast %33 : vector<8x1xf32> to vector<8x256xf32>
    %35 = arith.mulf %26, %34 : vector<8x256xf32>
    %36 = arith.addf %13, %35 : vector<8x256xf32>
    %c6 = arith.constant 6 : index
    %c0_20 = arith.constant 0 : index
    %c0_21 = arith.constant 0 : index
    %37 = vector.load %arg2[%c6, %c0_20, %c0_21] : memref<36x8x1xf32, #tpu.memory_space<vmem>>, vector<1x8x1xf32>
    %38 = vector.shape_cast %37 : vector<1x8x1xf32> to vector<8x1xf32>
    %39 = vector.broadcast %38 : vector<8x1xf32> to vector<8x256xf32>
    %40 = arith.mulf %26, %39 : vector<8x256xf32>
    %41 = arith.addf %17, %40 : vector<8x256xf32>
    %c7 = arith.constant 7 : index
    %c0_22 = arith.constant 0 : index
    %c0_23 = arith.constant 0 : index
    %42 = vector.load %arg2[%c7, %c0_22, %c0_23] : memref<36x8x1xf32, #tpu.memory_space<vmem>>, vector<1x8x1xf32>
    %43 = vector.shape_cast %42 : vector<1x8x1xf32> to vector<8x1xf32>
    %44 = vector.broadcast %43 : vector<8x1xf32> to vector<8x256xf32>
    %45 = arith.mulf %26, %44 : vector<8x256xf32>
    %46 = arith.addf %21, %45 : vector<8x256xf32>
    %c15_i32 = arith.constant 15 : i32
    %47 = tpu.dynamic_rotate %0 by %c15_i32 dim 1 : vector<8x256xf32>, i32 -> vector<8x256xf32>
    %c2_24 = arith.constant 2 : index
    %c0_25 = arith.constant 0 : index
    %c0_26 = arith.constant 0 : index
    %48 = vector.load %arg6[%c2_24, %c0_25, %c0_26] : memref<9x1x256xf32, #tpu.memory_space<vmem>>, vector<1x1x256xf32>
    %49 = vector.shape_cast %48 : vector<1x1x256xf32> to vector<1x256xf32>
    %50 = vector.broadcast %49 : vector<1x256xf32> to vector<8x256xf32>
    %51 = arith.mulf %47, %50 : vector<8x256xf32>
    %c8 = arith.constant 8 : index
    %c0_27 = arith.constant 0 : index
    %c0_28 = arith.constant 0 : index
    %52 = vector.load %arg2[%c8, %c0_27, %c0_28] : memref<36x8x1xf32, #tpu.memory_space<vmem>>, vector<1x8x1xf32>
    %53 = vector.shape_cast %52 : vector<1x8x1xf32> to vector<8x1xf32>
    %54 = vector.broadcast %53 : vector<8x1xf32> to vector<8x256xf32>
    %55 = arith.mulf %51, %54 : vector<8x256xf32>
    %56 = arith.addf %31, %55 : vector<8x256xf32>
    %c9 = arith.constant 9 : index
    %c0_29 = arith.constant 0 : index
    %c0_30 = arith.constant 0 : index
    %57 = vector.load %arg2[%c9, %c0_29, %c0_30] : memref<36x8x1xf32, #tpu.memory_space<vmem>>, vector<1x8x1xf32>
    %58 = vector.shape_cast %57 : vector<1x8x1xf32> to vector<8x1xf32>
    %59 = vector.broadcast %58 : vector<8x1xf32> to vector<8x256xf32>
    %60 = arith.mulf %51, %59 : vector<8x256xf32>
    %61 = arith.addf %36, %60 : vector<8x256xf32>
    %c10 = arith.constant 10 : index
    %c0_31 = arith.constant 0 : index
    %c0_32 = arith.constant 0 : index
    %62 = vector.load %arg2[%c10, %c0_31, %c0_32] : memref<36x8x1xf32, #tpu.memory_space<vmem>>, vector<1x8x1xf32>
    %63 = vector.shape_cast %62 : vector<1x8x1xf32> to vector<8x1xf32>
    %64 = vector.broadcast %63 : vector<8x1xf32> to vector<8x256xf32>
    %65 = arith.mulf %51, %64 : vector<8x256xf32>
    %66 = arith.addf %41, %65 : vector<8x256xf32>
    %c11 = arith.constant 11 : index
    %c0_33 = arith.constant 0 : index
    %c0_34 = arith.constant 0 : index
    %67 = vector.load %arg2[%c11, %c0_33, %c0_34] : memref<36x8x1xf32, #tpu.memory_space<vmem>>, vector<1x8x1xf32>
    %68 = vector.shape_cast %67 : vector<1x8x1xf32> to vector<8x1xf32>
    %69 = vector.broadcast %68 : vector<8x1xf32> to vector<8x256xf32>
    %70 = arith.mulf %51, %69 : vector<8x256xf32>
    %71 = arith.addf %46, %70 : vector<8x256xf32>
    %c1_i32 = arith.constant 1 : i32
    %72 = tpu.dynamic_rotate %0 by %c1_i32 dim 1 : vector<8x256xf32>, i32 -> vector<8x256xf32>
    %c3_35 = arith.constant 3 : index
    %c0_36 = arith.constant 0 : index
    %c0_37 = arith.constant 0 : index
    %73 = vector.load %arg6[%c3_35, %c0_36, %c0_37] : memref<9x1x256xf32, #tpu.memory_space<vmem>>, vector<1x1x256xf32>
    %74 = vector.shape_cast %73 : vector<1x1x256xf32> to vector<1x256xf32>
    %75 = vector.broadcast %74 : vector<1x256xf32> to vector<8x256xf32>
    %76 = arith.mulf %72, %75 : vector<8x256xf32>
    %c12 = arith.constant 12 : index
    %c0_38 = arith.constant 0 : index
    %c0_39 = arith.constant 0 : index
    %77 = vector.load %arg2[%c12, %c0_38, %c0_39] : memref<36x8x1xf32, #tpu.memory_space<vmem>>, vector<1x8x1xf32>
    %78 = vector.shape_cast %77 : vector<1x8x1xf32> to vector<8x1xf32>
    %79 = vector.broadcast %78 : vector<8x1xf32> to vector<8x256xf32>
    %80 = arith.mulf %76, %79 : vector<8x256xf32>
    %81 = arith.addf %56, %80 : vector<8x256xf32>
    %c13 = arith.constant 13 : index
    %c0_40 = arith.constant 0 : index
    %c0_41 = arith.constant 0 : index
    %82 = vector.load %arg2[%c13, %c0_40, %c0_41] : memref<36x8x1xf32, #tpu.memory_space<vmem>>, vector<1x8x1xf32>
    %83 = vector.shape_cast %82 : vector<1x8x1xf32> to vector<8x1xf32>
    %84 = vector.broadcast %83 : vector<8x1xf32> to vector<8x256xf32>
    %85 = arith.mulf %76, %84 : vector<8x256xf32>
    %86 = arith.addf %61, %85 : vector<8x256xf32>
    %c14 = arith.constant 14 : index
    %c0_42 = arith.constant 0 : index
    %c0_43 = arith.constant 0 : index
    %87 = vector.load %arg2[%c14, %c0_42, %c0_43] : memref<36x8x1xf32, #tpu.memory_space<vmem>>, vector<1x8x1xf32>
    %88 = vector.shape_cast %87 : vector<1x8x1xf32> to vector<8x1xf32>
    %89 = vector.broadcast %88 : vector<8x1xf32> to vector<8x256xf32>
    %90 = arith.mulf %76, %89 : vector<8x256xf32>
    %91 = arith.addf %66, %90 : vector<8x256xf32>
    %c15 = arith.constant 15 : index
    %c0_44 = arith.constant 0 : index
    %c0_45 = arith.constant 0 : index
    %92 = vector.load %arg2[%c15, %c0_44, %c0_45] : memref<36x8x1xf32, #tpu.memory_space<vmem>>, vector<1x8x1xf32>
    %93 = vector.shape_cast %92 : vector<1x8x1xf32> to vector<8x1xf32>
    %94 = vector.broadcast %93 : vector<8x1xf32> to vector<8x256xf32>
    %95 = arith.mulf %76, %94 : vector<8x256xf32>
    %96 = arith.addf %71, %95 : vector<8x256xf32>
    %c16 = arith.constant 16 : index
    %c0_46 = arith.constant 0 : index
    %c0_47 = arith.constant 0 : index
    %97 = vector.load %arg2[%c16, %c0_46, %c0_47] : memref<36x8x1xf32, #tpu.memory_space<vmem>>, vector<1x8x1xf32>
    %98 = vector.shape_cast %97 : vector<1x8x1xf32> to vector<8x1xf32>
    %99 = vector.broadcast %98 : vector<8x1xf32> to vector<8x256xf32>
    %100 = arith.mulf %0, %99 : vector<8x256xf32>
    %101 = arith.addf %81, %100 : vector<8x256xf32>
    %c17 = arith.constant 17 : index
    %c0_48 = arith.constant 0 : index
    %c0_49 = arith.constant 0 : index
    %102 = vector.load %arg2[%c17, %c0_48, %c0_49] : memref<36x8x1xf32, #tpu.memory_space<vmem>>, vector<1x8x1xf32>
    %103 = vector.shape_cast %102 : vector<1x8x1xf32> to vector<8x1xf32>
    %104 = vector.broadcast %103 : vector<8x1xf32> to vector<8x256xf32>
    %105 = arith.mulf %0, %104 : vector<8x256xf32>
    %106 = arith.addf %86, %105 : vector<8x256xf32>
    %c18 = arith.constant 18 : index
    %c0_50 = arith.constant 0 : index
    %c0_51 = arith.constant 0 : index
    %107 = vector.load %arg2[%c18, %c0_50, %c0_51] : memref<36x8x1xf32, #tpu.memory_space<vmem>>, vector<1x8x1xf32>
    %108 = vector.shape_cast %107 : vector<1x8x1xf32> to vector<8x1xf32>
    %109 = vector.broadcast %108 : vector<8x1xf32> to vector<8x256xf32>
    %110 = arith.mulf %0, %109 : vector<8x256xf32>
    %111 = arith.addf %91, %110 : vector<8x256xf32>
    %c19 = arith.constant 19 : index
    %c0_52 = arith.constant 0 : index
    %c0_53 = arith.constant 0 : index
    %112 = vector.load %arg2[%c19, %c0_52, %c0_53] : memref<36x8x1xf32, #tpu.memory_space<vmem>>, vector<1x8x1xf32>
    %113 = vector.shape_cast %112 : vector<1x8x1xf32> to vector<8x1xf32>
    %114 = vector.broadcast %113 : vector<8x1xf32> to vector<8x256xf32>
    %115 = arith.mulf %0, %114 : vector<8x256xf32>
    %116 = arith.addf %96, %115 : vector<8x256xf32>
    %c255_i32 = arith.constant 255 : i32
    %117 = tpu.dynamic_rotate %0 by %c255_i32 dim 1 : vector<8x256xf32>, i32 -> vector<8x256xf32>
    %c5_54 = arith.constant 5 : index
    %c0_55 = arith.constant 0 : index
    %c0_56 = arith.constant 0 : index
    %118 = vector.load %arg6[%c5_54, %c0_55, %c0_56] : memref<9x1x256xf32, #tpu.memory_space<vmem>>, vector<1x1x256xf32>
    %119 = vector.shape_cast %118 : vector<1x1x256xf32> to vector<1x256xf32>
    %120 = vector.broadcast %119 : vector<1x256xf32> to vector<8x256xf32>
    %121 = arith.mulf %117, %120 : vector<8x256xf32>
    %c20 = arith.constant 20 : index
    %c0_57 = arith.constant 0 : index
    %c0_58 = arith.constant 0 : index
    %122 = vector.load %arg2[%c20, %c0_57, %c0_58] : memref<36x8x1xf32, #tpu.memory_space<vmem>>, vector<1x8x1xf32>
    %123 = vector.shape_cast %122 : vector<1x8x1xf32> to vector<8x1xf32>
    %124 = vector.broadcast %123 : vector<8x1xf32> to vector<8x256xf32>
    %125 = arith.mulf %121, %124 : vector<8x256xf32>
    %126 = arith.addf %101, %125 : vector<8x256xf32>
    %c21 = arith.constant 21 : index
    %c0_59 = arith.constant 0 : index
    %c0_60 = arith.constant 0 : index
    %127 = vector.load %arg2[%c21, %c0_59, %c0_60] : memref<36x8x1xf32, #tpu.memory_space<vmem>>, vector<1x8x1xf32>
    %128 = vector.shape_cast %127 : vector<1x8x1xf32> to vector<8x1xf32>
    %129 = vector.broadcast %128 : vector<8x1xf32> to vector<8x256xf32>
    %130 = arith.mulf %121, %129 : vector<8x256xf32>
    %131 = arith.addf %106, %130 : vector<8x256xf32>
    %c22 = arith.constant 22 : index
    %c0_61 = arith.constant 0 : index
    %c0_62 = arith.constant 0 : index
    %132 = vector.load %arg2[%c22, %c0_61, %c0_62] : memref<36x8x1xf32, #tpu.memory_space<vmem>>, vector<1x8x1xf32>
    %133 = vector.shape_cast %132 : vector<1x8x1xf32> to vector<8x1xf32>
    %134 = vector.broadcast %133 : vector<8x1xf32> to vector<8x256xf32>
    %135 = arith.mulf %121, %134 : vector<8x256xf32>
    %136 = arith.addf %111, %135 : vector<8x256xf32>
    %c23 = arith.constant 23 : index
    %c0_63 = arith.constant 0 : index
    %c0_64 = arith.constant 0 : index
    %137 = vector.load %arg2[%c23, %c0_63, %c0_64] : memref<36x8x1xf32, #tpu.memory_space<vmem>>, vector<1x8x1xf32>
    %138 = vector.shape_cast %137 : vector<1x8x1xf32> to vector<8x1xf32>
    %139 = vector.broadcast %138 : vector<8x1xf32> to vector<8x256xf32>
    %140 = arith.mulf %121, %139 : vector<8x256xf32>
    %141 = arith.addf %116, %140 : vector<8x256xf32>
    %c241_i32 = arith.constant 241 : i32
    %142 = tpu.dynamic_rotate %0 by %c241_i32 dim 1 : vector<8x256xf32>, i32 -> vector<8x256xf32>
    %c6_65 = arith.constant 6 : index
    %c0_66 = arith.constant 0 : index
    %c0_67 = arith.constant 0 : index
    %143 = vector.load %arg6[%c6_65, %c0_66, %c0_67] : memref<9x1x256xf32, #tpu.memory_space<vmem>>, vector<1x1x256xf32>
    %144 = vector.shape_cast %143 : vector<1x1x256xf32> to vector<1x256xf32>
    %145 = vector.broadcast %144 : vector<1x256xf32> to vector<8x256xf32>
    %146 = arith.mulf %142, %145 : vector<8x256xf32>
    %c24 = arith.constant 24 : index
    %c0_68 = arith.constant 0 : index
    %c0_69 = arith.constant 0 : index
    %147 = vector.load %arg2[%c24, %c0_68, %c0_69] : memref<36x8x1xf32, #tpu.memory_space<vmem>>, vector<1x8x1xf32>
    %148 = vector.shape_cast %147 : vector<1x8x1xf32> to vector<8x1xf32>
    %149 = vector.broadcast %148 : vector<8x1xf32> to vector<8x256xf32>
    %150 = arith.mulf %146, %149 : vector<8x256xf32>
    %151 = arith.addf %126, %150 : vector<8x256xf32>
    %c25 = arith.constant 25 : index
    %c0_70 = arith.constant 0 : index
    %c0_71 = arith.constant 0 : index
    %152 = vector.load %arg2[%c25, %c0_70, %c0_71] : memref<36x8x1xf32, #tpu.memory_space<vmem>>, vector<1x8x1xf32>
    %153 = vector.shape_cast %152 : vector<1x8x1xf32> to vector<8x1xf32>
    %154 = vector.broadcast %153 : vector<8x1xf32> to vector<8x256xf32>
    %155 = arith.mulf %146, %154 : vector<8x256xf32>
    %156 = arith.addf %131, %155 : vector<8x256xf32>
    %c26 = arith.constant 26 : index
    %c0_72 = arith.constant 0 : index
    %c0_73 = arith.constant 0 : index
    %157 = vector.load %arg2[%c26, %c0_72, %c0_73] : memref<36x8x1xf32, #tpu.memory_space<vmem>>, vector<1x8x1xf32>
    %158 = vector.shape_cast %157 : vector<1x8x1xf32> to vector<8x1xf32>
    %159 = vector.broadcast %158 : vector<8x1xf32> to vector<8x256xf32>
    %160 = arith.mulf %146, %159 : vector<8x256xf32>
    %161 = arith.addf %136, %160 : vector<8x256xf32>
    %c27 = arith.constant 27 : index
    %c0_74 = arith.constant 0 : index
    %c0_75 = arith.constant 0 : index
    %162 = vector.load %arg2[%c27, %c0_74, %c0_75] : memref<36x8x1xf32, #tpu.memory_space<vmem>>, vector<1x8x1xf32>
    %163 = vector.shape_cast %162 : vector<1x8x1xf32> to vector<8x1xf32>
    %164 = vector.broadcast %163 : vector<8x1xf32> to vector<8x256xf32>
    %165 = arith.mulf %146, %164 : vector<8x256xf32>
    %166 = arith.addf %141, %165 : vector<8x256xf32>
    %c240_i32 = arith.constant 240 : i32
    %167 = tpu.dynamic_rotate %0 by %c240_i32 dim 1 : vector<8x256xf32>, i32 -> vector<8x256xf32>
    %c7_76 = arith.constant 7 : index
    %c0_77 = arith.constant 0 : index
    %c0_78 = arith.constant 0 : index
    %168 = vector.load %arg6[%c7_76, %c0_77, %c0_78] : memref<9x1x256xf32, #tpu.memory_space<vmem>>, vector<1x1x256xf32>
    %169 = vector.shape_cast %168 : vector<1x1x256xf32> to vector<1x256xf32>
    %170 = vector.broadcast %169 : vector<1x256xf32> to vector<8x256xf32>
    %171 = arith.mulf %167, %170 : vector<8x256xf32>
    %c28 = arith.constant 28 : index
    %c0_79 = arith.constant 0 : index
    %c0_80 = arith.constant 0 : index
    %172 = vector.load %arg2[%c28, %c0_79, %c0_80] : memref<36x8x1xf32, #tpu.memory_space<vmem>>, vector<1x8x1xf32>
    %173 = vector.shape_cast %172 : vector<1x8x1xf32> to vector<8x1xf32>
    %174 = vector.broadcast %173 : vector<8x1xf32> to vector<8x256xf32>
    %175 = arith.mulf %171, %174 : vector<8x256xf32>
    %176 = arith.addf %151, %175 : vector<8x256xf32>
    %c29 = arith.constant 29 : index
    %c0_81 = arith.constant 0 : index
    %c0_82 = arith.constant 0 : index
    %177 = vector.load %arg2[%c29, %c0_81, %c0_82] : memref<36x8x1xf32, #tpu.memory_space<vmem>>, vector<1x8x1xf32>
    %178 = vector.shape_cast %177 : vector<1x8x1xf32> to vector<8x1xf32>
    %179 = vector.broadcast %178 : vector<8x1xf32> to vector<8x256xf32>
    %180 = arith.mulf %171, %179 : vector<8x256xf32>
    %181 = arith.addf %156, %180 : vector<8x256xf32>
    %c30 = arith.constant 30 : index
    %c0_83 = arith.constant 0 : index
    %c0_84 = arith.constant 0 : index
    %182 = vector.load %arg2[%c30, %c0_83, %c0_84] : memref<36x8x1xf32, #tpu.memory_space<vmem>>, vector<1x8x1xf32>
    %183 = vector.shape_cast %182 : vector<1x8x1xf32> to vector<8x1xf32>
    %184 = vector.broadcast %183 : vector<8x1xf32> to vector<8x256xf32>
    %185 = arith.mulf %171, %184 : vector<8x256xf32>
    %186 = arith.addf %161, %185 : vector<8x256xf32>
    %c31 = arith.constant 31 : index
    %c0_85 = arith.constant 0 : index
    %c0_86 = arith.constant 0 : index
    %187 = vector.load %arg2[%c31, %c0_85, %c0_86] : memref<36x8x1xf32, #tpu.memory_space<vmem>>, vector<1x8x1xf32>
    %188 = vector.shape_cast %187 : vector<1x8x1xf32> to vector<8x1xf32>
    %189 = vector.broadcast %188 : vector<8x1xf32> to vector<8x256xf32>
    %190 = arith.mulf %171, %189 : vector<8x256xf32>
    %191 = arith.addf %166, %190 : vector<8x256xf32>
    %c239_i32 = arith.constant 239 : i32
    %192 = tpu.dynamic_rotate %0 by %c239_i32 dim 1 : vector<8x256xf32>, i32 -> vector<8x256xf32>
    %c8_87 = arith.constant 8 : index
    %c0_88 = arith.constant 0 : index
    %c0_89 = arith.constant 0 : index
    %193 = vector.load %arg6[%c8_87, %c0_88, %c0_89] : memref<9x1x256xf32, #tpu.memory_space<vmem>>, vector<1x1x256xf32>
    %194 = vector.shape_cast %193 : vector<1x1x256xf32> to vector<1x256xf32>
    %195 = vector.broadcast %194 : vector<1x256xf32> to vector<8x256xf32>
    %196 = arith.mulf %192, %195 : vector<8x256xf32>
    %c32 = arith.constant 32 : index
    %c0_90 = arith.constant 0 : index
    %c0_91 = arith.constant 0 : index
    %197 = vector.load %arg2[%c32, %c0_90, %c0_91] : memref<36x8x1xf32, #tpu.memory_space<vmem>>, vector<1x8x1xf32>
    %198 = vector.shape_cast %197 : vector<1x8x1xf32> to vector<8x1xf32>
    %199 = vector.broadcast %198 : vector<8x1xf32> to vector<8x256xf32>
    %200 = arith.mulf %196, %199 : vector<8x256xf32>
    %201 = arith.addf %176, %200 : vector<8x256xf32>
    %c33 = arith.constant 33 : index
    %c0_92 = arith.constant 0 : index
    %c0_93 = arith.constant 0 : index
    %202 = vector.load %arg2[%c33, %c0_92, %c0_93] : memref<36x8x1xf32, #tpu.memory_space<vmem>>, vector<1x8x1xf32>
    %203 = vector.shape_cast %202 : vector<1x8x1xf32> to vector<8x1xf32>
    %204 = vector.broadcast %203 : vector<8x1xf32> to vector<8x256xf32>
    %205 = arith.mulf %196, %204 : vector<8x256xf32>
    %206 = arith.addf %181, %205 : vector<8x256xf32>
    %c34 = arith.constant 34 : index
    %c0_94 = arith.constant 0 : index
    %c0_95 = arith.constant 0 : index
    %207 = vector.load %arg2[%c34, %c0_94, %c0_95] : memref<36x8x1xf32, #tpu.memory_space<vmem>>, vector<1x8x1xf32>
    %208 = vector.shape_cast %207 : vector<1x8x1xf32> to vector<8x1xf32>
    %209 = vector.broadcast %208 : vector<8x1xf32> to vector<8x256xf32>
    %210 = arith.mulf %196, %209 : vector<8x256xf32>
    %211 = arith.addf %186, %210 : vector<8x256xf32>
    %c35 = arith.constant 35 : index
    %c0_96 = arith.constant 0 : index
    %c0_97 = arith.constant 0 : index
    %212 = vector.load %arg2[%c35, %c0_96, %c0_97] : memref<36x8x1xf32, #tpu.memory_space<vmem>>, vector<1x8x1xf32>
    %213 = vector.shape_cast %212 : vector<1x8x1xf32> to vector<8x1xf32>
    %214 = vector.broadcast %213 : vector<8x1xf32> to vector<8x256xf32>
    %215 = arith.mulf %196, %214 : vector<8x256xf32>
    %216 = arith.addf %191, %215 : vector<8x256xf32>
    %217 = vector.extract_strided_slice %201 {offsets = [0, 0], sizes = [2, 256], strides = [1, 1]} : vector<8x256xf32> to vector<2x256xf32>
    %218 = vector.extract_strided_slice %201 {offsets = [2, 0], sizes = [2, 256], strides = [1, 1]} : vector<8x256xf32> to vector<2x256xf32>
    %219 = arith.addf %217, %218 : vector<2x256xf32>
    %220 = vector.extract_strided_slice %201 {offsets = [4, 0], sizes = [2, 256], strides = [1, 1]} : vector<8x256xf32> to vector<2x256xf32>
    %221 = arith.addf %219, %220 : vector<2x256xf32>
    %222 = vector.extract_strided_slice %201 {offsets = [6, 0], sizes = [2, 256], strides = [1, 1]} : vector<8x256xf32> to vector<2x256xf32>
    %223 = arith.addf %221, %222 : vector<2x256xf32>
    %c0_98 = arith.constant 0 : index
    %224 = memref.load %arg3[%c0_98] : memref<4xf32, #tpu.memory_space<smem>>
    %225 = vector.broadcast %224 : f32 to vector<2x256xf32>
    %226 = arith.addf %223, %225 : vector<2x256xf32>
    %227 = vector.extract_strided_slice %206 {offsets = [0, 0], sizes = [2, 256], strides = [1, 1]} : vector<8x256xf32> to vector<2x256xf32>
    %228 = vector.extract_strided_slice %206 {offsets = [2, 0], sizes = [2, 256], strides = [1, 1]} : vector<8x256xf32> to vector<2x256xf32>
    %229 = arith.addf %227, %228 : vector<2x256xf32>
    %230 = vector.extract_strided_slice %206 {offsets = [4, 0], sizes = [2, 256], strides = [1, 1]} : vector<8x256xf32> to vector<2x256xf32>
    %231 = arith.addf %229, %230 : vector<2x256xf32>
    %232 = vector.extract_strided_slice %206 {offsets = [6, 0], sizes = [2, 256], strides = [1, 1]} : vector<8x256xf32> to vector<2x256xf32>
    %233 = arith.addf %231, %232 : vector<2x256xf32>
    %c1_99 = arith.constant 1 : index
    %234 = memref.load %arg3[%c1_99] : memref<4xf32, #tpu.memory_space<smem>>
    %235 = vector.broadcast %234 : f32 to vector<2x256xf32>
    %236 = arith.addf %233, %235 : vector<2x256xf32>
    %237 = vector.extract_strided_slice %211 {offsets = [0, 0], sizes = [2, 256], strides = [1, 1]} : vector<8x256xf32> to vector<2x256xf32>
    %238 = vector.extract_strided_slice %211 {offsets = [2, 0], sizes = [2, 256], strides = [1, 1]} : vector<8x256xf32> to vector<2x256xf32>
    %239 = arith.addf %237, %238 : vector<2x256xf32>
    %240 = vector.extract_strided_slice %211 {offsets = [4, 0], sizes = [2, 256], strides = [1, 1]} : vector<8x256xf32> to vector<2x256xf32>
    %241 = arith.addf %239, %240 : vector<2x256xf32>
    %242 = vector.extract_strided_slice %211 {offsets = [6, 0], sizes = [2, 256], strides = [1, 1]} : vector<8x256xf32> to vector<2x256xf32>
    %243 = arith.addf %241, %242 : vector<2x256xf32>
    %c2_100 = arith.constant 2 : index
    %244 = memref.load %arg3[%c2_100] : memref<4xf32, #tpu.memory_space<smem>>
    %245 = vector.broadcast %244 : f32 to vector<2x256xf32>
    %246 = arith.addf %243, %245 : vector<2x256xf32>
    %247 = vector.extract_strided_slice %216 {offsets = [0, 0], sizes = [2, 256], strides = [1, 1]} : vector<8x256xf32> to vector<2x256xf32>
    %248 = vector.extract_strided_slice %216 {offsets = [2, 0], sizes = [2, 256], strides = [1, 1]} : vector<8x256xf32> to vector<2x256xf32>
    %249 = arith.addf %247, %248 : vector<2x256xf32>
    %250 = vector.extract_strided_slice %216 {offsets = [4, 0], sizes = [2, 256], strides = [1, 1]} : vector<8x256xf32> to vector<2x256xf32>
    %251 = arith.addf %249, %250 : vector<2x256xf32>
    %252 = vector.extract_strided_slice %216 {offsets = [6, 0], sizes = [2, 256], strides = [1, 1]} : vector<8x256xf32> to vector<2x256xf32>
    %253 = arith.addf %251, %252 : vector<2x256xf32>
    %c3_101 = arith.constant 3 : index
    %254 = memref.load %arg3[%c3_101] : memref<4xf32, #tpu.memory_space<smem>>
    %255 = vector.broadcast %254 : f32 to vector<2x256xf32>
    %256 = arith.addf %253, %255 : vector<2x256xf32>
    %cst = arith.constant 0.000000e+00 : f32
    %257 = vector.broadcast %cst : f32 to vector<2x256xf32>
    %258 = arith.maximumf %226, %257 : vector<2x256xf32>
    %c0_102 = arith.constant 0 : index
    %c0_103 = arith.constant 0 : index
    %259 = vector.load %arg8[%c0_102, %c0_103] : memref<8x256xf32, #tpu.memory_space<vmem>>, vector<2x256xf32>
    tpu.vector_store %arg8[%c0_102, %c0_103], %258 {strides = array<i32>} : memref<8x256xf32, #tpu.memory_space<vmem>>, vector<2x256xf32>,
    %cst_104 = arith.constant 0.000000e+00 : f32
    %260 = vector.broadcast %cst_104 : f32 to vector<2x256xf32>
    %261 = arith.maximumf %236, %260 : vector<2x256xf32>
    %c2_105 = arith.constant 2 : index
    %c0_106 = arith.constant 0 : index
    %262 = vector.load %arg8[%c2_105, %c0_106] : memref<8x256xf32, #tpu.memory_space<vmem>>, vector<2x256xf32>
    tpu.vector_store %arg8[%c2_105, %c0_106], %261 {strides = array<i32>} : memref<8x256xf32, #tpu.memory_space<vmem>>, vector<2x256xf32>,
    %cst_107 = arith.constant 0.000000e+00 : f32
    %263 = vector.broadcast %cst_107 : f32 to vector<2x256xf32>
    %264 = arith.maximumf %246, %263 : vector<2x256xf32>
    %c4_108 = arith.constant 4 : index
    %c0_109 = arith.constant 0 : index
    %265 = vector.load %arg8[%c4_108, %c0_109] : memref<8x256xf32, #tpu.memory_space<vmem>>, vector<2x256xf32>
    tpu.vector_store %arg8[%c4_108, %c0_109], %264 {strides = array<i32>} : memref<8x256xf32, #tpu.memory_space<vmem>>, vector<2x256xf32>,
    %cst_110 = arith.constant 0.000000e+00 : f32
    %266 = vector.broadcast %cst_110 : f32 to vector<2x256xf32>
    %267 = arith.maximumf %256, %266 : vector<2x256xf32>
    %c6_111 = arith.constant 6 : index
    %c0_112 = arith.constant 0 : index
    %268 = vector.load %arg8[%c6_111, %c0_112] : memref<8x256xf32, #tpu.memory_space<vmem>>, vector<2x256xf32>
    tpu.vector_store %arg8[%c6_111, %c0_112], %267 {strides = array<i32>} : memref<8x256xf32, #tpu.memory_space<vmem>>, vector<2x256xf32>,
    %c0_113 = arith.constant 0 : index
    %c0_114 = arith.constant 0 : index
    %269 = vector.load %arg8[%c0_113, %c0_114] : memref<8x256xf32, #tpu.memory_space<vmem>>, vector<8x256xf32>
    %c17_i32_115 = arith.constant 17 : i32
    %270 = tpu.dynamic_rotate %269 by %c17_i32_115 dim 1 : vector<8x256xf32>, i32 -> vector<8x256xf32>
    %c0_116 = arith.constant 0 : index
    %c0_117 = arith.constant 0 : index
    %c0_118 = arith.constant 0 : index
    %271 = vector.load %arg6[%c0_116, %c0_117, %c0_118] : memref<9x1x256xf32, #tpu.memory_space<vmem>>, vector<1x1x256xf32>
    %272 = vector.shape_cast %271 : vector<1x1x256xf32> to vector<1x256xf32>
    %273 = vector.broadcast %272 : vector<1x256xf32> to vector<8x256xf32>
    %274 = arith.mulf %270, %273 : vector<8x256xf32>
    %c0_119 = arith.constant 0 : index
    %c0_120 = arith.constant 0 : index
    %c0_121 = arith.constant 0 : index
    %275 = vector.load %arg4[%c0_119, %c0_120, %c0_121] : memref<36x8x1xf32, #tpu.memory_space<vmem>>, vector<1x8x1xf32>
    %276 = vector.shape_cast %275 : vector<1x8x1xf32> to vector<8x1xf32>
    %277 = vector.broadcast %276 : vector<8x1xf32> to vector<8x256xf32>
    %278 = arith.mulf %274, %277 : vector<8x256xf32>
    %c1_122 = arith.constant 1 : index
    %c0_123 = arith.constant 0 : index
    %c0_124 = arith.constant 0 : index
    %279 = vector.load %arg4[%c1_122, %c0_123, %c0_124] : memref<36x8x1xf32, #tpu.memory_space<vmem>>, vector<1x8x1xf32>
    %280 = vector.shape_cast %279 : vector<1x8x1xf32> to vector<8x1xf32>
    %281 = vector.broadcast %280 : vector<8x1xf32> to vector<8x256xf32>
    %282 = arith.mulf %274, %281 : vector<8x256xf32>
    %c2_125 = arith.constant 2 : index
    %c0_126 = arith.constant 0 : index
    %c0_127 = arith.constant 0 : index
    %283 = vector.load %arg4[%c2_125, %c0_126, %c0_127] : memref<36x8x1xf32, #tpu.memory_space<vmem>>, vector<1x8x1xf32>
    %284 = vector.shape_cast %283 : vector<1x8x1xf32> to vector<8x1xf32>
    %285 = vector.broadcast %284 : vector<8x1xf32> to vector<8x256xf32>
    %286 = arith.mulf %274, %285 : vector<8x256xf32>
    %c3_128 = arith.constant 3 : index
    %c0_129 = arith.constant 0 : index
    %c0_130 = arith.constant 0 : index
    %287 = vector.load %arg4[%c3_128, %c0_129, %c0_130] : memref<36x8x1xf32, #tpu.memory_space<vmem>>, vector<1x8x1xf32>
    %288 = vector.shape_cast %287 : vector<1x8x1xf32> to vector<8x1xf32>
    %289 = vector.broadcast %288 : vector<8x1xf32> to vector<8x256xf32>
    %290 = arith.mulf %274, %289 : vector<8x256xf32>
    %c16_i32_131 = arith.constant 16 : i32
    %291 = tpu.dynamic_rotate %269 by %c16_i32_131 dim 1 : vector<8x256xf32>, i32 -> vector<8x256xf32>
    %c1_132 = arith.constant 1 : index
    %c0_133 = arith.constant 0 : index
    %c0_134 = arith.constant 0 : index
    %292 = vector.load %arg6[%c1_132, %c0_133, %c0_134] : memref<9x1x256xf32, #tpu.memory_space<vmem>>, vector<1x1x256xf32>
    %293 = vector.shape_cast %292 : vector<1x1x256xf32> to vector<1x256xf32>
    %294 = vector.broadcast %293 : vector<1x256xf32> to vector<8x256xf32>
    %295 = arith.mulf %291, %294 : vector<8x256xf32>
    %c4_135 = arith.constant 4 : index
    %c0_136 = arith.constant 0 : index
    %c0_137 = arith.constant 0 : index
    %296 = vector.load %arg4[%c4_135, %c0_136, %c0_137] : memref<36x8x1xf32, #tpu.memory_space<vmem>>, vector<1x8x1xf32>
    %297 = vector.shape_cast %296 : vector<1x8x1xf32> to vector<8x1xf32>
    %298 = vector.broadcast %297 : vector<8x1xf32> to vector<8x256xf32>
    %299 = arith.mulf %295, %298 : vector<8x256xf32>
    %300 = arith.addf %278, %299 : vector<8x256xf32>
    %c5_138 = arith.constant 5 : index
    %c0_139 = arith.constant 0 : index
    %c0_140 = arith.constant 0 : index
    %301 = vector.load %arg4[%c5_138, %c0_139, %c0_140] : memref<36x8x1xf32, #tpu.memory_space<vmem>>, vector<1x8x1xf32>
    %302 = vector.shape_cast %301 : vector<1x8x1xf32> to vector<8x1xf32>
    %303 = vector.broadcast %302 : vector<8x1xf32> to vector<8x256xf32>
    %304 = arith.mulf %295, %303 : vector<8x256xf32>
    %305 = arith.addf %282, %304 : vector<8x256xf32>
    %c6_141 = arith.constant 6 : index
    %c0_142 = arith.constant 0 : index
    %c0_143 = arith.constant 0 : index
    %306 = vector.load %arg4[%c6_141, %c0_142, %c0_143] : memref<36x8x1xf32, #tpu.memory_space<vmem>>, vector<1x8x1xf32>
    %307 = vector.shape_cast %306 : vector<1x8x1xf32> to vector<8x1xf32>
    %308 = vector.broadcast %307 : vector<8x1xf32> to vector<8x256xf32>
    %309 = arith.mulf %295, %308 : vector<8x256xf32>
    %310 = arith.addf %286, %309 : vector<8x256xf32>
    %c7_144 = arith.constant 7 : index
    %c0_145 = arith.constant 0 : index
    %c0_146 = arith.constant 0 : index
    %311 = vector.load %arg4[%c7_144, %c0_145, %c0_146] : memref<36x8x1xf32, #tpu.memory_space<vmem>>, vector<1x8x1xf32>
    %312 = vector.shape_cast %311 : vector<1x8x1xf32> to vector<8x1xf32>
    %313 = vector.broadcast %312 : vector<8x1xf32> to vector<8x256xf32>
    %314 = arith.mulf %295, %313 : vector<8x256xf32>
    %315 = arith.addf %290, %314 : vector<8x256xf32>
    %c15_i32_147 = arith.constant 15 : i32
    %316 = tpu.dynamic_rotate %269 by %c15_i32_147 dim 1 : vector<8x256xf32>, i32 -> vector<8x256xf32>
    %c2_148 = arith.constant 2 : index
    %c0_149 = arith.constant 0 : index
    %c0_150 = arith.constant 0 : index
    %317 = vector.load %arg6[%c2_148, %c0_149, %c0_150] : memref<9x1x256xf32, #tpu.memory_space<vmem>>, vector<1x1x256xf32>
    %318 = vector.shape_cast %317 : vector<1x1x256xf32> to vector<1x256xf32>
    %319 = vector.broadcast %318 : vector<1x256xf32> to vector<8x256xf32>
    %320 = arith.mulf %316, %319 : vector<8x256xf32>
    %c8_151 = arith.constant 8 : index
    %c0_152 = arith.constant 0 : index
    %c0_153 = arith.constant 0 : index
    %321 = vector.load %arg4[%c8_151, %c0_152, %c0_153] : memref<36x8x1xf32, #tpu.memory_space<vmem>>, vector<1x8x1xf32>
    %322 = vector.shape_cast %321 : vector<1x8x1xf32> to vector<8x1xf32>
    %323 = vector.broadcast %322 : vector<8x1xf32> to vector<8x256xf32>
    %324 = arith.mulf %320, %323 : vector<8x256xf32>
    %325 = arith.addf %300, %324 : vector<8x256xf32>
    %c9_154 = arith.constant 9 : index
    %c0_155 = arith.constant 0 : index
    %c0_156 = arith.constant 0 : index
    %326 = vector.load %arg4[%c9_154, %c0_155, %c0_156] : memref<36x8x1xf32, #tpu.memory_space<vmem>>, vector<1x8x1xf32>
    %327 = vector.shape_cast %326 : vector<1x8x1xf32> to vector<8x1xf32>
    %328 = vector.broadcast %327 : vector<8x1xf32> to vector<8x256xf32>
    %329 = arith.mulf %320, %328 : vector<8x256xf32>
    %330 = arith.addf %305, %329 : vector<8x256xf32>
    %c10_157 = arith.constant 10 : index
    %c0_158 = arith.constant 0 : index
    %c0_159 = arith.constant 0 : index
    %331 = vector.load %arg4[%c10_157, %c0_158, %c0_159] : memref<36x8x1xf32, #tpu.memory_space<vmem>>, vector<1x8x1xf32>
    %332 = vector.shape_cast %331 : vector<1x8x1xf32> to vector<8x1xf32>
    %333 = vector.broadcast %332 : vector<8x1xf32> to vector<8x256xf32>
    %334 = arith.mulf %320, %333 : vector<8x256xf32>
    %335 = arith.addf %310, %334 : vector<8x256xf32>
    %c11_160 = arith.constant 11 : index
    %c0_161 = arith.constant 0 : index
    %c0_162 = arith.constant 0 : index
    %336 = vector.load %arg4[%c11_160, %c0_161, %c0_162] : memref<36x8x1xf32, #tpu.memory_space<vmem>>, vector<1x8x1xf32>
    %337 = vector.shape_cast %336 : vector<1x8x1xf32> to vector<8x1xf32>
    %338 = vector.broadcast %337 : vector<8x1xf32> to vector<8x256xf32>
    %339 = arith.mulf %320, %338 : vector<8x256xf32>
    %340 = arith.addf %315, %339 : vector<8x256xf32>
    %c1_i32_163 = arith.constant 1 : i32
    %341 = tpu.dynamic_rotate %269 by %c1_i32_163 dim 1 : vector<8x256xf32>, i32 -> vector<8x256xf32>
    %c3_164 = arith.constant 3 : index
    %c0_165 = arith.constant 0 : index
    %c0_166 = arith.constant 0 : index
    %342 = vector.load %arg6[%c3_164, %c0_165, %c0_166] : memref<9x1x256xf32, #tpu.memory_space<vmem>>, vector<1x1x256xf32>
    %343 = vector.shape_cast %342 : vector<1x1x256xf32> to vector<1x256xf32>
    %344 = vector.broadcast %343 : vector<1x256xf32> to vector<8x256xf32>
    %345 = arith.mulf %341, %344 : vector<8x256xf32>
    %c12_167 = arith.constant 12 : index
    %c0_168 = arith.constant 0 : index
    %c0_169 = arith.constant 0 : index
    %346 = vector.load %arg4[%c12_167, %c0_168, %c0_169] : memref<36x8x1xf32, #tpu.memory_space<vmem>>, vector<1x8x1xf32>
    %347 = vector.shape_cast %346 : vector<1x8x1xf32> to vector<8x1xf32>
    %348 = vector.broadcast %347 : vector<8x1xf32> to vector<8x256xf32>
    %349 = arith.mulf %345, %348 : vector<8x256xf32>
    %350 = arith.addf %325, %349 : vector<8x256xf32>
    %c13_170 = arith.constant 13 : index
    %c0_171 = arith.constant 0 : index
    %c0_172 = arith.constant 0 : index
    %351 = vector.load %arg4[%c13_170, %c0_171, %c0_172] : memref<36x8x1xf32, #tpu.memory_space<vmem>>, vector<1x8x1xf32>
    %352 = vector.shape_cast %351 : vector<1x8x1xf32> to vector<8x1xf32>
    %353 = vector.broadcast %352 : vector<8x1xf32> to vector<8x256xf32>
    %354 = arith.mulf %345, %353 : vector<8x256xf32>
    %355 = arith.addf %330, %354 : vector<8x256xf32>
    %c14_173 = arith.constant 14 : index
    %c0_174 = arith.constant 0 : index
    %c0_175 = arith.constant 0 : index
    %356 = vector.load %arg4[%c14_173, %c0_174, %c0_175] : memref<36x8x1xf32, #tpu.memory_space<vmem>>, vector<1x8x1xf32>
    %357 = vector.shape_cast %356 : vector<1x8x1xf32> to vector<8x1xf32>
    %358 = vector.broadcast %357 : vector<8x1xf32> to vector<8x256xf32>
    %359 = arith.mulf %345, %358 : vector<8x256xf32>
    %360 = arith.addf %335, %359 : vector<8x256xf32>
    %c15_176 = arith.constant 15 : index
    %c0_177 = arith.constant 0 : index
    %c0_178 = arith.constant 0 : index
    %361 = vector.load %arg4[%c15_176, %c0_177, %c0_178] : memref<36x8x1xf32, #tpu.memory_space<vmem>>, vector<1x8x1xf32>
    %362 = vector.shape_cast %361 : vector<1x8x1xf32> to vector<8x1xf32>
    %363 = vector.broadcast %362 : vector<8x1xf32> to vector<8x256xf32>
    %364 = arith.mulf %345, %363 : vector<8x256xf32>
    %365 = arith.addf %340, %364 : vector<8x256xf32>
    %c16_179 = arith.constant 16 : index
    %c0_180 = arith.constant 0 : index
    %c0_181 = arith.constant 0 : index
    %366 = vector.load %arg4[%c16_179, %c0_180, %c0_181] : memref<36x8x1xf32, #tpu.memory_space<vmem>>, vector<1x8x1xf32>
    %367 = vector.shape_cast %366 : vector<1x8x1xf32> to vector<8x1xf32>
    %368 = vector.broadcast %367 : vector<8x1xf32> to vector<8x256xf32>
    %369 = arith.mulf %269, %368 : vector<8x256xf32>
    %370 = arith.addf %350, %369 : vector<8x256xf32>
    %c17_182 = arith.constant 17 : index
    %c0_183 = arith.constant 0 : index
    %c0_184 = arith.constant 0 : index
    %371 = vector.load %arg4[%c17_182, %c0_183, %c0_184] : memref<36x8x1xf32, #tpu.memory_space<vmem>>, vector<1x8x1xf32>
    %372 = vector.shape_cast %371 : vector<1x8x1xf32> to vector<8x1xf32>
    %373 = vector.broadcast %372 : vector<8x1xf32> to vector<8x256xf32>
    %374 = arith.mulf %269, %373 : vector<8x256xf32>
    %375 = arith.addf %355, %374 : vector<8x256xf32>
    %c18_185 = arith.constant 18 : index
    %c0_186 = arith.constant 0 : index
    %c0_187 = arith.constant 0 : index
    %376 = vector.load %arg4[%c18_185, %c0_186, %c0_187] : memref<36x8x1xf32, #tpu.memory_space<vmem>>, vector<1x8x1xf32>
    %377 = vector.shape_cast %376 : vector<1x8x1xf32> to vector<8x1xf32>
    %378 = vector.broadcast %377 : vector<8x1xf32> to vector<8x256xf32>
    %379 = arith.mulf %269, %378 : vector<8x256xf32>
    %380 = arith.addf %360, %379 : vector<8x256xf32>
    %c19_188 = arith.constant 19 : index
    %c0_189 = arith.constant 0 : index
    %c0_190 = arith.constant 0 : index
    %381 = vector.load %arg4[%c19_188, %c0_189, %c0_190] : memref<36x8x1xf32, #tpu.memory_space<vmem>>, vector<1x8x1xf32>
    %382 = vector.shape_cast %381 : vector<1x8x1xf32> to vector<8x1xf32>
    %383 = vector.broadcast %382 : vector<8x1xf32> to vector<8x256xf32>
    %384 = arith.mulf %269, %383 : vector<8x256xf32>
    %385 = arith.addf %365, %384 : vector<8x256xf32>
    %c255_i32_191 = arith.constant 255 : i32
    %386 = tpu.dynamic_rotate %269 by %c255_i32_191 dim 1 : vector<8x256xf32>, i32 -> vector<8x256xf32>
    %c5_192 = arith.constant 5 : index
    %c0_193 = arith.constant 0 : index
    %c0_194 = arith.constant 0 : index
    %387 = vector.load %arg6[%c5_192, %c0_193, %c0_194] : memref<9x1x256xf32, #tpu.memory_space<vmem>>, vector<1x1x256xf32>
    %388 = vector.shape_cast %387 : vector<1x1x256xf32> to vector<1x256xf32>
    %389 = vector.broadcast %388 : vector<1x256xf32> to vector<8x256xf32>
    %390 = arith.mulf %386, %389 : vector<8x256xf32>
    %c20_195 = arith.constant 20 : index
    %c0_196 = arith.constant 0 : index
    %c0_197 = arith.constant 0 : index
    %391 = vector.load %arg4[%c20_195, %c0_196, %c0_197] : memref<36x8x1xf32, #tpu.memory_space<vmem>>, vector<1x8x1xf32>
    %392 = vector.shape_cast %391 : vector<1x8x1xf32> to vector<8x1xf32>
    %393 = vector.broadcast %392 : vector<8x1xf32> to vector<8x256xf32>
    %394 = arith.mulf %390, %393 : vector<8x256xf32>
    %395 = arith.addf %370, %394 : vector<8x256xf32>
    %c21_198 = arith.constant 21 : index
    %c0_199 = arith.constant 0 : index
    %c0_200 = arith.constant 0 : index
    %396 = vector.load %arg4[%c21_198, %c0_199, %c0_200] : memref<36x8x1xf32, #tpu.memory_space<vmem>>, vector<1x8x1xf32>
    %397 = vector.shape_cast %396 : vector<1x8x1xf32> to vector<8x1xf32>
    %398 = vector.broadcast %397 : vector<8x1xf32> to vector<8x256xf32>
    %399 = arith.mulf %390, %398 : vector<8x256xf32>
    %400 = arith.addf %375, %399 : vector<8x256xf32>
    %c22_201 = arith.constant 22 : index
    %c0_202 = arith.constant 0 : index
    %c0_203 = arith.constant 0 : index
    %401 = vector.load %arg4[%c22_201, %c0_202, %c0_203] : memref<36x8x1xf32, #tpu.memory_space<vmem>>, vector<1x8x1xf32>
    %402 = vector.shape_cast %401 : vector<1x8x1xf32> to vector<8x1xf32>
    %403 = vector.broadcast %402 : vector<8x1xf32> to vector<8x256xf32>
    %404 = arith.mulf %390, %403 : vector<8x256xf32>
    %405 = arith.addf %380, %404 : vector<8x256xf32>
    %c23_204 = arith.constant 23 : index
    %c0_205 = arith.constant 0 : index
    %c0_206 = arith.constant 0 : index
    %406 = vector.load %arg4[%c23_204, %c0_205, %c0_206] : memref<36x8x1xf32, #tpu.memory_space<vmem>>, vector<1x8x1xf32>
    %407 = vector.shape_cast %406 : vector<1x8x1xf32> to vector<8x1xf32>
    %408 = vector.broadcast %407 : vector<8x1xf32> to vector<8x256xf32>
    %409 = arith.mulf %390, %408 : vector<8x256xf32>
    %410 = arith.addf %385, %409 : vector<8x256xf32>
    %c241_i32_207 = arith.constant 241 : i32
    %411 = tpu.dynamic_rotate %269 by %c241_i32_207 dim 1 : vector<8x256xf32>, i32 -> vector<8x256xf32>
    %c6_208 = arith.constant 6 : index
    %c0_209 = arith.constant 0 : index
    %c0_210 = arith.constant 0 : index
    %412 = vector.load %arg6[%c6_208, %c0_209, %c0_210] : memref<9x1x256xf32, #tpu.memory_space<vmem>>, vector<1x1x256xf32>
    %413 = vector.shape_cast %412 : vector<1x1x256xf32> to vector<1x256xf32>
    %414 = vector.broadcast %413 : vector<1x256xf32> to vector<8x256xf32>
    %415 = arith.mulf %411, %414 : vector<8x256xf32>
    %c24_211 = arith.constant 24 : index
    %c0_212 = arith.constant 0 : index
    %c0_213 = arith.constant 0 : index
    %416 = vector.load %arg4[%c24_211, %c0_212, %c0_213] : memref<36x8x1xf32, #tpu.memory_space<vmem>>, vector<1x8x1xf32>
    %417 = vector.shape_cast %416 : vector<1x8x1xf32> to vector<8x1xf32>
    %418 = vector.broadcast %417 : vector<8x1xf32> to vector<8x256xf32>
    %419 = arith.mulf %415, %418 : vector<8x256xf32>
    %420 = arith.addf %395, %419 : vector<8x256xf32>
    %c25_214 = arith.constant 25 : index
    %c0_215 = arith.constant 0 : index
    %c0_216 = arith.constant 0 : index
    %421 = vector.load %arg4[%c25_214, %c0_215, %c0_216] : memref<36x8x1xf32, #tpu.memory_space<vmem>>, vector<1x8x1xf32>
    %422 = vector.shape_cast %421 : vector<1x8x1xf32> to vector<8x1xf32>
    %423 = vector.broadcast %422 : vector<8x1xf32> to vector<8x256xf32>
    %424 = arith.mulf %415, %423 : vector<8x256xf32>
    %425 = arith.addf %400, %424 : vector<8x256xf32>
    %c26_217 = arith.constant 26 : index
    %c0_218 = arith.constant 0 : index
    %c0_219 = arith.constant 0 : index
    %426 = vector.load %arg4[%c26_217, %c0_218, %c0_219] : memref<36x8x1xf32, #tpu.memory_space<vmem>>, vector<1x8x1xf32>
    %427 = vector.shape_cast %426 : vector<1x8x1xf32> to vector<8x1xf32>
    %428 = vector.broadcast %427 : vector<8x1xf32> to vector<8x256xf32>
    %429 = arith.mulf %415, %428 : vector<8x256xf32>
    %430 = arith.addf %405, %429 : vector<8x256xf32>
    %c27_220 = arith.constant 27 : index
    %c0_221 = arith.constant 0 : index
    %c0_222 = arith.constant 0 : index
    %431 = vector.load %arg4[%c27_220, %c0_221, %c0_222] : memref<36x8x1xf32, #tpu.memory_space<vmem>>, vector<1x8x1xf32>
    %432 = vector.shape_cast %431 : vector<1x8x1xf32> to vector<8x1xf32>
    %433 = vector.broadcast %432 : vector<8x1xf32> to vector<8x256xf32>
    %434 = arith.mulf %415, %433 : vector<8x256xf32>
    %435 = arith.addf %410, %434 : vector<8x256xf32>
    %c240_i32_223 = arith.constant 240 : i32
    %436 = tpu.dynamic_rotate %269 by %c240_i32_223 dim 1 : vector<8x256xf32>, i32 -> vector<8x256xf32>
    %c7_224 = arith.constant 7 : index
    %c0_225 = arith.constant 0 : index
    %c0_226 = arith.constant 0 : index
    %437 = vector.load %arg6[%c7_224, %c0_225, %c0_226] : memref<9x1x256xf32, #tpu.memory_space<vmem>>, vector<1x1x256xf32>
    %438 = vector.shape_cast %437 : vector<1x1x256xf32> to vector<1x256xf32>
    %439 = vector.broadcast %438 : vector<1x256xf32> to vector<8x256xf32>
    %440 = arith.mulf %436, %439 : vector<8x256xf32>
    %c28_227 = arith.constant 28 : index
    %c0_228 = arith.constant 0 : index
    %c0_229 = arith.constant 0 : index
    %441 = vector.load %arg4[%c28_227, %c0_228, %c0_229] : memref<36x8x1xf32, #tpu.memory_space<vmem>>, vector<1x8x1xf32>
    %442 = vector.shape_cast %441 : vector<1x8x1xf32> to vector<8x1xf32>
    %443 = vector.broadcast %442 : vector<8x1xf32> to vector<8x256xf32>
    %444 = arith.mulf %440, %443 : vector<8x256xf32>
    %445 = arith.addf %420, %444 : vector<8x256xf32>
    %c29_230 = arith.constant 29 : index
    %c0_231 = arith.constant 0 : index
    %c0_232 = arith.constant 0 : index
    %446 = vector.load %arg4[%c29_230, %c0_231, %c0_232] : memref<36x8x1xf32, #tpu.memory_space<vmem>>, vector<1x8x1xf32>
    %447 = vector.shape_cast %446 : vector<1x8x1xf32> to vector<8x1xf32>
    %448 = vector.broadcast %447 : vector<8x1xf32> to vector<8x256xf32>
    %449 = arith.mulf %440, %448 : vector<8x256xf32>
    %450 = arith.addf %425, %449 : vector<8x256xf32>
    %c30_233 = arith.constant 30 : index
    %c0_234 = arith.constant 0 : index
    %c0_235 = arith.constant 0 : index
    %451 = vector.load %arg4[%c30_233, %c0_234, %c0_235] : memref<36x8x1xf32, #tpu.memory_space<vmem>>, vector<1x8x1xf32>
    %452 = vector.shape_cast %451 : vector<1x8x1xf32> to vector<8x1xf32>
    %453 = vector.broadcast %452 : vector<8x1xf32> to vector<8x256xf32>
    %454 = arith.mulf %440, %453 : vector<8x256xf32>
    %455 = arith.addf %430, %454 : vector<8x256xf32>
    %c31_236 = arith.constant 31 : index
    %c0_237 = arith.constant 0 : index
    %c0_238 = arith.constant 0 : index
    %456 = vector.load %arg4[%c31_236, %c0_237, %c0_238] : memref<36x8x1xf32, #tpu.memory_space<vmem>>, vector<1x8x1xf32>
    %457 = vector.shape_cast %456 : vector<1x8x1xf32> to vector<8x1xf32>
    %458 = vector.broadcast %457 : vector<8x1xf32> to vector<8x256xf32>
    %459 = arith.mulf %440, %458 : vector<8x256xf32>
    %460 = arith.addf %435, %459 : vector<8x256xf32>
    %c239_i32_239 = arith.constant 239 : i32
    %461 = tpu.dynamic_rotate %269 by %c239_i32_239 dim 1 : vector<8x256xf32>, i32 -> vector<8x256xf32>
    %c8_240 = arith.constant 8 : index
    %c0_241 = arith.constant 0 : index
    %c0_242 = arith.constant 0 : index
    %462 = vector.load %arg6[%c8_240, %c0_241, %c0_242] : memref<9x1x256xf32, #tpu.memory_space<vmem>>, vector<1x1x256xf32>
    %463 = vector.shape_cast %462 : vector<1x1x256xf32> to vector<1x256xf32>
    %464 = vector.broadcast %463 : vector<1x256xf32> to vector<8x256xf32>
    %465 = arith.mulf %461, %464 : vector<8x256xf32>
    %c32_243 = arith.constant 32 : index
    %c0_244 = arith.constant 0 : index
    %c0_245 = arith.constant 0 : index
    %466 = vector.load %arg4[%c32_243, %c0_244, %c0_245] : memref<36x8x1xf32, #tpu.memory_space<vmem>>, vector<1x8x1xf32>
    %467 = vector.shape_cast %466 : vector<1x8x1xf32> to vector<8x1xf32>
    %468 = vector.broadcast %467 : vector<8x1xf32> to vector<8x256xf32>
    %469 = arith.mulf %465, %468 : vector<8x256xf32>
    %470 = arith.addf %445, %469 : vector<8x256xf32>
    %c33_246 = arith.constant 33 : index
    %c0_247 = arith.constant 0 : index
    %c0_248 = arith.constant 0 : index
    %471 = vector.load %arg4[%c33_246, %c0_247, %c0_248] : memref<36x8x1xf32, #tpu.memory_space<vmem>>, vector<1x8x1xf32>
    %472 = vector.shape_cast %471 : vector<1x8x1xf32> to vector<8x1xf32>
    %473 = vector.broadcast %472 : vector<8x1xf32> to vector<8x256xf32>
    %474 = arith.mulf %465, %473 : vector<8x256xf32>
    %475 = arith.addf %450, %474 : vector<8x256xf32>
    %c34_249 = arith.constant 34 : index
    %c0_250 = arith.constant 0 : index
    %c0_251 = arith.constant 0 : index
    %476 = vector.load %arg4[%c34_249, %c0_250, %c0_251] : memref<36x8x1xf32, #tpu.memory_space<vmem>>, vector<1x8x1xf32>
    %477 = vector.shape_cast %476 : vector<1x8x1xf32> to vector<8x1xf32>
    %478 = vector.broadcast %477 : vector<8x1xf32> to vector<8x256xf32>
    %479 = arith.mulf %465, %478 : vector<8x256xf32>
    %480 = arith.addf %455, %479 : vector<8x256xf32>
    %c35_252 = arith.constant 35 : index
    %c0_253 = arith.constant 0 : index
    %c0_254 = arith.constant 0 : index
    %481 = vector.load %arg4[%c35_252, %c0_253, %c0_254] : memref<36x8x1xf32, #tpu.memory_space<vmem>>, vector<1x8x1xf32>
    %482 = vector.shape_cast %481 : vector<1x8x1xf32> to vector<8x1xf32>
    %483 = vector.broadcast %482 : vector<8x1xf32> to vector<8x256xf32>
    %484 = arith.mulf %465, %483 : vector<8x256xf32>
    %485 = arith.addf %460, %484 : vector<8x256xf32>
    %486 = vector.extract_strided_slice %470 {offsets = [0, 0], sizes = [2, 256], strides = [1, 1]} : vector<8x256xf32> to vector<2x256xf32>
    %487 = vector.extract_strided_slice %470 {offsets = [2, 0], sizes = [2, 256], strides = [1, 1]} : vector<8x256xf32> to vector<2x256xf32>
    %488 = arith.addf %486, %487 : vector<2x256xf32>
    %489 = vector.extract_strided_slice %470 {offsets = [4, 0], sizes = [2, 256], strides = [1, 1]} : vector<8x256xf32> to vector<2x256xf32>
    %490 = arith.addf %488, %489 : vector<2x256xf32>
    %491 = vector.extract_strided_slice %470 {offsets = [6, 0], sizes = [2, 256], strides = [1, 1]} : vector<8x256xf32> to vector<2x256xf32>
    %492 = arith.addf %490, %491 : vector<2x256xf32>
    %c0_255 = arith.constant 0 : index
    %493 = memref.load %arg5[%c0_255] : memref<4xf32, #tpu.memory_space<smem>>
    %494 = vector.broadcast %493 : f32 to vector<2x256xf32>
    %495 = arith.addf %492, %494 : vector<2x256xf32>
    %496 = vector.extract_strided_slice %475 {offsets = [0, 0], sizes = [2, 256], strides = [1, 1]} : vector<8x256xf32> to vector<2x256xf32>
    %497 = vector.extract_strided_slice %475 {offsets = [2, 0], sizes = [2, 256], strides = [1, 1]} : vector<8x256xf32> to vector<2x256xf32>
    %498 = arith.addf %496, %497 : vector<2x256xf32>
    %499 = vector.extract_strided_slice %475 {offsets = [4, 0], sizes = [2, 256], strides = [1, 1]} : vector<8x256xf32> to vector<2x256xf32>
    %500 = arith.addf %498, %499 : vector<2x256xf32>
    %501 = vector.extract_strided_slice %475 {offsets = [6, 0], sizes = [2, 256], strides = [1, 1]} : vector<8x256xf32> to vector<2x256xf32>
    %502 = arith.addf %500, %501 : vector<2x256xf32>
    %c1_256 = arith.constant 1 : index
    %503 = memref.load %arg5[%c1_256] : memref<4xf32, #tpu.memory_space<smem>>
    %504 = vector.broadcast %503 : f32 to vector<2x256xf32>
    %505 = arith.addf %502, %504 : vector<2x256xf32>
    %506 = vector.extract_strided_slice %480 {offsets = [0, 0], sizes = [2, 256], strides = [1, 1]} : vector<8x256xf32> to vector<2x256xf32>
    %507 = vector.extract_strided_slice %480 {offsets = [2, 0], sizes = [2, 256], strides = [1, 1]} : vector<8x256xf32> to vector<2x256xf32>
    %508 = arith.addf %506, %507 : vector<2x256xf32>
    %509 = vector.extract_strided_slice %480 {offsets = [4, 0], sizes = [2, 256], strides = [1, 1]} : vector<8x256xf32> to vector<2x256xf32>
    %510 = arith.addf %508, %509 : vector<2x256xf32>
    %511 = vector.extract_strided_slice %480 {offsets = [6, 0], sizes = [2, 256], strides = [1, 1]} : vector<8x256xf32> to vector<2x256xf32>
    %512 = arith.addf %510, %511 : vector<2x256xf32>
    %c2_257 = arith.constant 2 : index
    %513 = memref.load %arg5[%c2_257] : memref<4xf32, #tpu.memory_space<smem>>
    %514 = vector.broadcast %513 : f32 to vector<2x256xf32>
    %515 = arith.addf %512, %514 : vector<2x256xf32>
    %516 = vector.extract_strided_slice %485 {offsets = [0, 0], sizes = [2, 256], strides = [1, 1]} : vector<8x256xf32> to vector<2x256xf32>
    %517 = vector.extract_strided_slice %485 {offsets = [2, 0], sizes = [2, 256], strides = [1, 1]} : vector<8x256xf32> to vector<2x256xf32>
    %518 = arith.addf %516, %517 : vector<2x256xf32>
    %519 = vector.extract_strided_slice %485 {offsets = [4, 0], sizes = [2, 256], strides = [1, 1]} : vector<8x256xf32> to vector<2x256xf32>
    %520 = arith.addf %518, %519 : vector<2x256xf32>
    %521 = vector.extract_strided_slice %485 {offsets = [6, 0], sizes = [2, 256], strides = [1, 1]} : vector<8x256xf32> to vector<2x256xf32>
    %522 = arith.addf %520, %521 : vector<2x256xf32>
    %c3_258 = arith.constant 3 : index
    %523 = memref.load %arg5[%c3_258] : memref<4xf32, #tpu.memory_space<smem>>
    %524 = vector.broadcast %523 : f32 to vector<2x256xf32>
    %525 = arith.addf %522, %524 : vector<2x256xf32>
    %526 = vector.extract_strided_slice %0 {offsets = [0, 0], sizes = [2, 256], strides = [1, 1]} : vector<8x256xf32> to vector<2x256xf32>
    %527 = arith.addf %495, %526 : vector<2x256xf32>
    %c0_259 = arith.constant 0 : index
    %c0_260 = arith.constant 0 : index
    %528 = vector.load %arg7[%c0_259, %c0_260] : memref<8x256xf32, #tpu.memory_space<vmem>>, vector<2x256xf32>
    tpu.vector_store %arg7[%c0_259, %c0_260], %527 {strides = array<i32>} : memref<8x256xf32, #tpu.memory_space<vmem>>, vector<2x256xf32>,
    %529 = vector.extract_strided_slice %0 {offsets = [2, 0], sizes = [2, 256], strides = [1, 1]} : vector<8x256xf32> to vector<2x256xf32>
    %530 = arith.addf %505, %529 : vector<2x256xf32>
    %c2_261 = arith.constant 2 : index
    %c0_262 = arith.constant 0 : index
    %531 = vector.load %arg7[%c2_261, %c0_262] : memref<8x256xf32, #tpu.memory_space<vmem>>, vector<2x256xf32>
    tpu.vector_store %arg7[%c2_261, %c0_262], %530 {strides = array<i32>} : memref<8x256xf32, #tpu.memory_space<vmem>>, vector<2x256xf32>,
    %532 = vector.extract_strided_slice %0 {offsets = [4, 0], sizes = [2, 256], strides = [1, 1]} : vector<8x256xf32> to vector<2x256xf32>
    %533 = arith.addf %515, %532 : vector<2x256xf32>
    %c4_263 = arith.constant 4 : index
    %c0_264 = arith.constant 0 : index
    %534 = vector.load %arg7[%c4_263, %c0_264] : memref<8x256xf32, #tpu.memory_space<vmem>>, vector<2x256xf32>
    tpu.vector_store %arg7[%c4_263, %c0_264], %533 {strides = array<i32>} : memref<8x256xf32, #tpu.memory_space<vmem>>, vector<2x256xf32>,
    %535 = vector.extract_strided_slice %0 {offsets = [6, 0], sizes = [2, 256], strides = [1, 1]} : vector<8x256xf32> to vector<2x256xf32>
    %536 = arith.addf %525, %535 : vector<2x256xf32>
    %c6_265 = arith.constant 6 : index
    %c0_266 = arith.constant 0 : index
    %537 = vector.load %arg7[%c6_265, %c0_266] : memref<8x256xf32, #tpu.memory_space<vmem>>, vector<2x256xf32>
    tpu.vector_store %arg7[%c6_265, %c0_266], %536 {strides = array<i32>} : memref<8x256xf32, #tpu.memory_space<vmem>>, vector<2x256xf32>,
    return
  }
  func.func @transform_0(%arg0: i32) -> (i32, i32) {
    %c0_i32 = arith.constant 0 : i32
    %c0_i32_0 = arith.constant 0 : i32
    return %arg0, %c0_i32 : i32, i32
  }
  func.func @transform_1(%arg0: i32) -> (i32, i32, i32) {
    %c0_i32 = arith.constant 0 : i32
    %c0_i32_0 = arith.constant 0 : i32
    %c0_i32_1 = arith.constant 0 : i32
    %c0_i32_2 = arith.constant 0 : i32
    return %c0_i32, %c0_i32_0, %c0_i32_1 : i32, i32, i32
  }
  func.func @transform_2(%arg0: i32) -> i32 {
    %c0_i32 = arith.constant 0 : i32
    %c0_i32_0 = arith.constant 0 : i32
    return %c0_i32 : i32
  }
  func.func @transform_3(%arg0: i32) -> (i32, i32, i32) {
    %c0_i32 = arith.constant 0 : i32
    %c0_i32_0 = arith.constant 0 : i32
    %c0_i32_1 = arith.constant 0 : i32
    %c0_i32_2 = arith.constant 0 : i32
    return %c0_i32, %c0_i32_0, %c0_i32_1 : i32, i32, i32
  }
  func.func @transform_4(%arg0: i32) -> i32 {
    %c0_i32 = arith.constant 0 : i32
    %c0_i32_0 = arith.constant 0 : i32
    return %c0_i32 : i32
  }
  func.func @transform_5(%arg0: i32) -> (i32, i32, i32) {
    %c0_i32 = arith.constant 0 : i32
    %c0_i32_0 = arith.constant 0 : i32
    %c0_i32_1 = arith.constant 0 : i32
    %c0_i32_2 = arith.constant 0 : i32
    return %c0_i32, %c0_i32_0, %c0_i32_1 : i32, i32, i32
  }
  func.func @transform_6(%arg0: i32) -> (i32, i32) {
    %c0_i32 = arith.constant 0 : i32
    %c0_i32_0 = arith.constant 0 : i32
    return %arg0, %c0_i32 : i32, i32
  }
}

</mosaic_0001>

<bundles_post_ra>
// kernel: tpu_custom_call.1
= control target key start
LH: loop header
LB: loop body
LE: loop exit
PB: predicated region body
PF: predicated region fallthrough
CT: control target
= control target key end

     0   :  { %11 = vsyncpa [#allocation5], 0  ;;  %s2605_s0 = inlined_call_operand.vmem [shape: f32[8,256], index: 0, kind: input, shape index: {}]   ;;  %s2606_s1 = inlined_call_operand.vmem [shape: f32[36,8,1], index: 1, kind: input, shape index: {}]   ;;  %s2607_s2 = inlined_call_operand.vmem [shape: f32[4], index: 2, kind: input, shape index: {}]   ;;  %s2608_s3 = inlined_call_operand.vmem [shape: f32[36,8,1], index: 3, kind: input, shape index: {}]   ;;  %s2609_s4 = inlined_call_operand.vmem [shape: f32[4], index: 4, kind: input, shape index: {}]   ;;  %s2610_s5 = inlined_call_operand.vmem [shape: f32[9,1,256], index: 5, kind: input, shape index: {}]   ;;  %s2611_s6 = inlined_call_operand.hbm [shape: f32[8,256], index: 6, kind: output, shape index: {}]  }
   0x1   :  { %12 = vsyncpa [#allocation7], 0 }
   0x2   :  { %13 = vsyncpa [#allocation4], 0  ;;  %s24_s23 = sshll.u32 %s2607_s2, 4  ;;  %s36_s26 = sshll.u32 %s2609_s4, 4  ;;  %s25_s23 = int_to_ptr.vmem [resolvable:$true] %s24_s23  ;;  %s37_s26 = int_to_ptr.vmem [resolvable:$true] %s36_s26 }
   0x3   :  { %s1560_s27 = scalar_lea.vmem %s25_s23, 16  ;;  %p1565_p1 = scmp.lt.s32.totalorder %s25_s23, %s25_s23 }
   0x4   :  { %p1561_p0 = scmp.ne.s32.totalorder %s25_s23, %s1560_s27  ;;  %p1566_p2 = scmp.lt.s32.totalorder %s1560_s27, %s1560_s27 }
   0x6   :  { %p1567_p3 = por %p1566_p2, %p1565_p1 }
   0x8   :  { %p1568_p4 = pnand %p1567_p3, %p1561_p0 }
   0xa   :  { %1571 = shalt.err (!%p1568_p4)
}
   0xb   :  { %s1612_s28 = smov [#allocation3]   ;;  %s1572_s29 = scalar_lea.vmem %s37_s26, 16 }
   0xc   :  { %27 = dma.vmem_to_smem %s25_s23, 16, %s1612_s28, [#allocation5]  }
   0xd   :  { %p1573_p5 = scmp.ne.s32.totalorder %s37_s26, %s1572_s29  ;;  %p1577_p6 = scmp.lt.s32.totalorder %s37_s26, %s37_s26 }
   0xe   :  { %p1578_p7 = scmp.lt.s32.totalorder %s1572_s29, %s1572_s29 }
  0x10   :  { %p1579_p8 = por %p1578_p7, %p1577_p6 }
  0x12   :  { %p1580_p9 = pnand %p1579_p8, %p1573_p5 }
  0x14   :  { %1583 = shalt.err (!%p1580_p9)
}
  0x15   :  { %s1613_s2 = smov [#allocation6]  }
  0x16   :  { %39 = dma.vmem_to_smem %s37_s26, 16, %s1613_s2, [#allocation7]  }
  0x17   :  { %1606 = dma.done.wait [#allocation5], 16  }
  0x18   :  { %1607 = vsyncadd [#allocation5], 4294967280 }
  0x19   :  { %1608 = dma.done.wait [#allocation7], 16  }
  0x1a   :  { %1609 = vsyncadd [#allocation7], 4294967280 }
  0x1b   :  { %48 = sfence }
  0x1c   :  { %v1668_v0 = vld [vmem:[%s2605_s0] sm:$0xff]  ;;  %v1614_v2 = vmov 0   ;;  %s1615_s9 = smov 17   ;;  %v1678_v3 = vld [vmem:[%s2605_s0 + $0x8] sm:$0xff]  ;;  %v1455_v5 = vld [vmem:[%s2606_s1 + $0x10] sm:$0xff]  ;;  %s1616_s18 = smov 16   ;;  %v55_v54 = vlaneseq }
  0x1d   :  { %v74_v1 = vld [vmem:[%s2606_s1] sm:$0xff]  ;;  %1556 = vset.pattern.permute.xlu1 %v1614_v2  ;;  %51 = vrot.lane.b32.xlu0 %v1668_v0, %s1615_s9  ;;  %v1454_v4 = vld [vmem:[%s2606_s1 + $0x8] sm:$0xff]  ;;  %v1456_v6 = vld [vmem:[%s2606_s1 + $0x18] sm:$0xff]  ;;  %s1617_s27 = smov 15   ;;  %s1618_s11 = smov 1  }
  0x1e   :  { %77 = vperm.xlu1 %1556, %v74_v1   ;;  %1557 = vset.pattern.permute.xlu0 %v1614_v2  ;;  %v1459_v7 = vld [vmem:[%s2606_s1 + $0x28] sm:$0xff]  ;;  %v1458_v8 = vld [vmem:[%s2606_s1 + $0x20] sm:$0xff]  ;;  %v1461_v9 = vld [vmem:[%s2606_s1 + $0x38] sm:$0xff]  ;;  %s1619_s2 = smov 127   ;;  %s1620_s15 = smov 113   ;;  %v63_v59 = vshrl.u32 %v55_v54, 7 }
  0x1f   :  { %v1460_v10 = vld [vmem:[%s2606_s1 + $0x30] sm:$0xff]  ;;  %v1464_v11 = vld [vmem:[%s2606_s1 + $0x48] sm:$0xff]  ;;  %v1463_v12 = vld [vmem:[%s2606_s1 + $0x40] sm:$0xff]  ;;  %s1621_s25 = smov 112   ;;  %s1622_s12 = smov 111   ;;  %v1878_v2 = vand.u32 127, %v55_v54 }
  0x20   :  { %v1466_v13 = vld [vmem:[%s2606_s1 + $0x58] sm:$0xff]  ;;  %v1465_v14 = vld [vmem:[%s2606_s1 + $0x50] sm:$0xff]  ;;  %v1469_v15 = vld [vmem:[%s2606_s1 + $0x68] sm:$0xff]  ;;  %s2028_s7 = sld [smem:[#allocation3 + $0x1]]  ;;  %s2156_s13 = sld [smem:[#allocation3 + $0x3]] }
  0x21   :  { %53 = vrot.lane.b32.xlu0 %v1678_v3, %s1615_s9  ;;  %v1468_v16 = vld [vmem:[%s2606_s1 + $0x60] sm:$0xff]  ;;  %v1471_v17 = vld [vmem:[%s2606_s1 + $0x78] sm:$0xff]  ;;  %v1470_v18 = vld [vmem:[%s2606_s1 + $0x70] sm:$0xff]  ;;  %vm113_vm0 = vcmp.lt.s32.totalorder %v1878_v2, 16  ;;  %vm57_vm1 = vcmp.lt.s32.totalorder %v1878_v2, 17  ;;  %vm179_vm2 = vcmp.lt.s32.totalorder %v1878_v2, 15 }
  0x22   :  { %86 = vperm.xlu1 %1556, %v1454_v4   ;;  %v1473_v19 = vld [vmem:[%s2606_s1 + $0x88] sm:$0xff]  ;;  %v1472_v20 = vld [vmem:[%s2606_s1 + $0x80] sm:$0xff]  ;;  %v1475_v21 = vld [vmem:[%s2606_s1 + $0x98] sm:$0xff]  ;;  %v1880_v4 = vsub.s32 0, %v63_v59  ;;  %vm245_vm3 = vcmp.lt.s32.totalorder %v1878_v2, 1  ;;  %vm355_vm4 = vcmp.lt.s32.totalorder %v1878_v2, 127 }
  0x23   :  { %v1474_v22 = vld [vmem:[%s2606_s1 + $0x90] sm:$0xff]  ;;  %v1478_v23 = vld [vmem:[%s2606_s1 + $0xa8] sm:$0xff]  ;;  %v1477_v24 = vld [vmem:[%s2606_s1 + $0xa0] sm:$0xff]  ;;  %vm421_vm5 = vcmp.lt.s32.totalorder %v1878_v2, 113  ;;  %vm487_vm6 = vcmp.lt.s32.totalorder %v1878_v2, 112  ;;  %vm553_vm7 = vcmp.lt.s32.totalorder %v1878_v2, 111 }
  0x24   :  { %v1480_v25 = vld [vmem:[%s2606_s1 + $0xb8] sm:$0xff]  ;;  %v1479_v26 = vld [vmem:[%s2606_s1 + $0xb0] sm:$0xff]  ;;  %v1483_v27 = vld [vmem:[%s2606_s1 + $0xc8] sm:$0xff]  ;;  %s2168_s14 = sld [smem:[#allocation3 + $0x2]]  ;;  %s2351_s16 = sld [smem:[#allocation6]] }
  0x25   :  { %95 = vperm.xlu0 %1557, %v1455_v5   ;;  %v1482_v28 = vld [vmem:[%s2606_s1 + $0xc0] sm:$0xff]  ;;  %v1485_v29 = vld [vmem:[%s2606_s1 + $0xd8] sm:$0xff]  ;;  %v1484_v30 = vld [vmem:[%s2606_s1 + $0xd0] sm:$0xff]  ;;  %v1882_v5 = vsub.s32 1, %v63_v59  ;;  %s2353_s17 = sld [smem:[#allocation6 + $0x1]]  ;;  %s2357_s19 = sld [smem:[#allocation6 + $0x3]] }
  0x26   :  { %104 = vperm.xlu1 %1556, %v1456_v6   ;;  %v1488_v31 = vld [vmem:[%s2606_s1 + $0xe8] sm:$0xff]  ;;  %v1487_v32 = vld [vmem:[%s2606_s1 + $0xe0] sm:$0xff]  ;;  %v1490_v33 = vld [vmem:[%s2606_s1 + $0xf8] sm:$0xff] }
  0x27   :  { %v1489_v34 = vld [vmem:[%s2606_s1 + $0xf0] sm:$0xff]  ;;  %v1493_v35 = vld [vmem:[%s2606_s1 + $0x108] sm:$0xff]  ;;  %v1492_v36 = vld [vmem:[%s2606_s1 + $0x100] sm:$0xff] }
  0x28   :  { %v1495_v37 = vld [vmem:[%s2606_s1 + $0x118] sm:$0xff]  ;;  %v1494_v38 = vld [vmem:[%s2606_s1 + $0x110] sm:$0xff]  ;;  %v1499_v39 = vld [vmem:[%s2608_s3 + $0x8] sm:$0xff]  ;;  %s2030_s1 = sld [smem:[#allocation3]] }
  0x29   :  { %111 = vrot.lane.b32.xlu0 %v1678_v3, %s1616_s18  ;;  %v767_v40 = vld [vmem:[%s2608_s3] sm:$0xff]  ;;  %v1501_v41 = vld [vmem:[%s2608_s3 + $0x18] sm:$0xff]  ;;  %v1500_v42 = vld [vmem:[%s2608_s3 + $0x10] sm:$0xff] }
  0x2a   :  { %109 = vrot.lane.b32.xlu1 %v1668_v0, %s1616_s18  ;;  %v1504_v43 = vld [vmem:[%s2608_s3 + $0x28] sm:$0xff]  ;;  %v1503_v44 = vld [vmem:[%s2608_s3 + $0x20] sm:$0xff]  ;;  %v1506_v45 = vld [vmem:[%s2608_s3 + $0x38] sm:$0xff] }
  0x2b   :  { %v1505_v46 = vld [vmem:[%s2608_s3 + $0x30] sm:$0xff]  ;;  %v1509_v47 = vld [vmem:[%s2608_s3 + $0x48] sm:$0xff]  ;;  %v1508_v48 = vld [vmem:[%s2608_s3 + $0x40] sm:$0xff] }
  0x2c   :  { %v1511_v49 = vld [vmem:[%s2608_s3 + $0x58] sm:$0xff]  ;;  %v1510_v50 = vld [vmem:[%s2608_s3 + $0x50] sm:$0xff]  ;;  %v1514_v52 = vld [vmem:[%s2608_s3 + $0x68] sm:$0xff] }
  0x2d   :  { %146 = vperm.xlu0 %1557, %v1459_v7   ;;  %v1513_v53 = vld [vmem:[%s2608_s3 + $0x60] sm:$0xff]  ;;  %v1516_v56 = vld [vmem:[%s2608_s3 + $0x78] sm:$0xff]  ;;  %v1515_v57 = vld [vmem:[%s2608_s3 + $0x70] sm:$0xff] }
  0x2e   :  { %135 = vperm.xlu1 %1556, %v1458_v8   ;;  %v1518_v61 = vld [vmem:[%s2608_s3 + $0x88] sm:$0xff]  ;;  %v1517_v62 = vld [vmem:[%s2608_s3 + $0x80] sm:$0xff]  ;;  %v1520_v7 = vld [vmem:[%s2608_s3 + $0x98] sm:$0xff] }
  0x2f   :  { %v1457_v1 = vld [vmem:[%s2610_s5 + $0x2] sm:$0x3] }
  0x30   :  { %v122_v8 = vrot.slane %v1457_v1, %v1880_v4 }
  0x31   :  { %168 = vperm.xlu0 %1557, %v1461_v9   ;;  %v126_v9 = vrot.slane %v1457_v1, %v1882_v5 }
  0x32   :  { %157 = vperm.xlu1 %1556, %v1460_v10   ;;  %v1519_v10 = vld [vmem:[%s2608_s3 + $0x90] sm:$0xff] }
  0x35   :  { %177 = vrot.lane.b32.xlu0 %v1678_v3, %s1617_s27 }
  0x36   :  { %175 = vrot.lane.b32.xlu1 %v1668_v0, %s1617_s27 }
  0x39   :  { %212 = vperm.xlu0 %1557, %v1464_v11  }
  0x3a   :  { %201 = vperm.xlu1 %1556, %v1463_v12  }
  0x3d   :  { %234 = vperm.xlu0 %1557, %v1466_v13  }
  0x3e   :  { %223 = vperm.xlu1 %1556, %v1465_v14  }
  0x41   :  { %243 = vrot.lane.b32.xlu0 %v1678_v3, %s1618_s11 }
  0x42   :  { %241 = vrot.lane.b32.xlu1 %v1668_v0, %s1618_s11 }
  0x45   :  { %278 = vperm.xlu0 %1557, %v1469_v15   ;;  %v1524_v15 = vld [vmem:[%s2608_s3 + $0xb0] sm:$0xff] }
  0x46   :  { %267 = vperm.xlu1 %1556, %v1468_v16  }
  0x49   :  { %300 = vperm.xlu0 %1557, %v1471_v17  }
  0x4a   :  { %289 = vperm.xlu1 %1556, %v1470_v18   ;;  %v1523_v18 = vld [vmem:[%s2608_s3 + $0xa8] sm:$0xff] }
  0x4d   :  { %322 = vperm.xlu0 %1557, %v1473_v19  }
  0x4e   :  { %311 = vperm.xlu1 %1556, %v1472_v20  }
  0x51   :  { %344 = vperm.xlu0 %1557, %v1475_v21  }
  0x52   :  { %333 = vperm.xlu1 %1556, %v1474_v22  }
  0x55   :  { %353 = vrot.lane.b32.xlu0 %v1678_v3, %s1619_s2 }
  0x56   :  { %351 = vrot.lane.b32.xlu1 %v1668_v0, %s1619_s2 }
  0x59   :  { %388 = vperm.xlu0 %1557, %v1478_v23  }
  0x5a   :  { %377 = vperm.xlu1 %1556, %v1477_v24  }
  0x5d   :  { %410 = vperm.xlu0 %1557, %v1480_v25   ;;  %v1522_v25 = vld [vmem:[%s2608_s3 + $0xa0] sm:$0xff] }
  0x5e   :  { %399 = vperm.xlu1 %1556, %v1479_v26   ;;  %v1525_v26 = vld [vmem:[%s2608_s3 + $0xb8] sm:$0xff] }
  0x61   :  { %419 = vrot.lane.b32.xlu0 %v1678_v3, %s1620_s15 }
  0x62   :  { %417 = vrot.lane.b32.xlu1 %v1668_v0, %s1620_s15 }
  0x65   :  { %454 = vperm.xlu0 %1557, %v1483_v27  }
  0x66   :  { %443 = vperm.xlu1 %1556, %v1482_v28  }
  0x69   :  { %476 = vperm.xlu0 %1557, %v1485_v29  }
  0x6a   :  { %465 = vperm.xlu1 %1556, %v1484_v30  }
  0x6d   :  { %485 = vrot.lane.b32.xlu0 %v1678_v3, %s1621_s25 }
  0x6e   :  { %483 = vrot.lane.b32.xlu1 %v1668_v0, %s1621_s25 }
  0x71   :  { %520 = vperm.xlu0 %1557, %v1488_v31  }
  0x72   :  { %509 = vperm.xlu1 %1556, %v1487_v32  }
  0x75   :  { %542 = vperm.xlu0 %1557, %v1490_v33   ;;  %v60_v33 = vld [vmem:[%s2610_s5] sm:$0x3] }
  0x76   :  { %531 = vperm.xlu1 %1556, %v1489_v34   ;;  %v1528_v34 = vld [vmem:[%s2608_s3 + $0xc8] sm:$0xff] }
  0x79   :  { %551 = vrot.lane.b32.xlu0 %v1678_v3, %s1622_s12 }
  0x7a   :  { %549 = vrot.lane.b32.xlu1 %v1668_v0, %s1622_s12 }
  0x7d   :  { %586 = vperm.xlu0 %1557, %v1493_v35  }
  0x7e   :  { %575 = vperm.xlu1 %1556, %v1492_v36   ;;  %v1462_v36 = vld [vmem:[%s2610_s5 + $0x4] sm:$0x3] }
  0x81   :  { %608 = vperm.xlu0 %1557, %v1495_v37  }
  0x82   :  { %597 = vperm.xlu1 %1556, %v1494_v38   ;;  %v65_v38 = vrot.slane %v60_v33, %v1880_v4 }
  0x85   :  { %779 = vperm.xlu0 %1557, %v1499_v39   ;;  %v69_v39 = vrot.slane %v60_v33, %v1882_v5 }
  0x86   :  { %770 = vperm.xlu1 %1556, %v767_v40  }
  0x89   :  { %797 = vperm.xlu0 %1557, %v1501_v41  }
  0x8a   :  { %788 = vperm.xlu1 %1556, %v1500_v42   ;;  %v188_v42 = vrot.slane %v1462_v36, %v1880_v4 }
  0x8d   :  { %837 = vperm.xlu0 %1557, %v1504_v43   ;;  %v192_v43 = vrot.slane %v1462_v36, %v1882_v5 }
  0x8e   :  { %826 = vperm.xlu1 %1556, %v1503_v44  }
  0x8f   :  { %v1851_v51 = vpop.permute.xlu0 %51 }
  0x91   :  { %859 = vperm.xlu0 %1557, %v1506_v45  }
  0x92   :  { %848 = vperm.xlu1 %1556, %v1505_v46  }
  0x93   :  { %v54_v58 = vpop.permute.xlu0 %53 }
  0x94   :  { %v58_v40 = vsel %vm57_vm1, %v1851_v51, %v54_v58  ;;  %v59_v41 = vsel %vm57_vm1, %v54_v58, %v1851_v51 }
  0x95   :  { %901 = vperm.xlu0 %1557, %v1509_v47  }
  0x96   :  { %890 = vperm.xlu1 %1556, %v1508_v48   ;;  %v72_v48 = vmul.f32 %v65_v38, %v59_v41 }
  0x99   :  { %923 = vperm.xlu0 %1557, %v1511_v49   ;;  %v73_v49 = vmul.f32 %v69_v39, %v58_v40 }
  0x9a   :  { %912 = vperm.xlu1 %1556, %v1510_v50  }
  0x9d   :  { %v1859_v55 = vpop.permute.xlu1 %77  ;;  %965 = vperm.xlu0 %1557, %v1514_v52  }
  0x9e   :  { %954 = vperm.xlu1 %1556, %v1513_v53  }
  0xa1   :  { %v1867_v60 = vpop.permute.xlu1 %86  ;;  %987 = vperm.xlu0 %1557, %v1516_v56  }
  0xa2   :  { %976 = vperm.xlu1 %1556, %v1515_v57   ;;  %v89_v40 = vmul.f32 %v1867_v60, %v72_v48  ;;  %v90_v41 = vmul.f32 %v1867_v60, %v73_v49 }
  0xa4   :  { %v96_v63 = vpop.permute.xlu0 %95 }
  0xa5   :  { %v1884_v6 = vpop.permute.xlu1 %104  ;;  %1009 = vperm.xlu0 %1557, %v1518_v61   ;;  %v98_v50 = vmul.f32 %v96_v63, %v72_v48  ;;  %v99_v52 = vmul.f32 %v96_v63, %v73_v49 }
  0xa6   :  { %998 = vperm.xlu1 %1556, %v1517_v62   ;;  %v108_v60 = vmul.f32 %v1884_v6, %v73_v49 }
  0xa8   :  { %v112_v11 = vpop.permute.xlu0 %111 }
  0xa9   :  { %v110_v12 = vpop.permute.xlu1 %109  ;;  %1031 = vperm.xlu0 %1557, %v1520_v7  }
  0xaa   :  { %v114_v13 = vsel %vm113_vm0, %v110_v12, %v112_v11  ;;  %v115_v14 = vsel %vm113_vm0, %v112_v11, %v110_v12  ;;  %1020 = vperm.xlu1 %1556, %v1519_v10  }
  0xab   :  { %v129_v16 = vmul.f32 %v122_v8, %v115_v14  ;;  %v130_v17 = vmul.f32 %v126_v9, %v114_v13 }
  0xac   :  { %v147_v19 = vpop.permute.xlu0 %146 }
  0xad   :  { %v1905_v20 = vmul.f32 %v147_v19, %v129_v16  ;;  %v1907_v21 = vmul.f32 %v147_v19, %v130_v17  ;;  %v136_v22 = vpop.permute.xlu1 %135  ;;  %1084 = vperm.xlu0 %1557, %v1524_v15   ;;  %v1467_v19 = vld [vmem:[%s2610_s5 + $0x6] sm:$0x3] }
  0xae   :  { %v1909_v23 = vmul.f32 %v136_v22, %v129_v16  ;;  %v1911_v24 = vmul.f32 %v136_v22, %v130_v17  ;;  %1073 = vperm.xlu1 %1556, %v1523_v18  }
  0xb0   :  { %v169_v27 = vpop.permute.xlu0 %168 }
  0xb1   :  { %v1919_v28 = vmul.f32 %v169_v27, %v129_v16  ;;  %v1921_v29 = vmul.f32 %v169_v27, %v130_v17  ;;  %v158_v30 = vpop.permute.xlu1 %157  ;;  %1062 = vperm.xlu0 %1557, %v1522_v25   ;;  %v1991_v25 = vld [vmem:[%s2610_s5 + $0xa] sm:$0x3]  ;;  %v254_v27 = vrot.slane %v1467_v19, %v1880_v4 }
  0xb2   :  { %v160_v31 = vmul.f32 %v158_v30, %v129_v16  ;;  %v161_v32 = vmul.f32 %v158_v30, %v130_v17  ;;  %1095 = vperm.xlu1 %1556, %v1525_v26   ;;  %v1996_v26 = vld [vmem:[%s2610_s5 + $0xc] sm:$0x3]  ;;  %v258_v30 = vrot.slane %v1467_v19, %v1882_v5  ;;  %v364_v36 = vrot.slane %v1991_v25, %v1880_v4 }
  0xb3   :  { %v430_v38 = vrot.slane %v1996_v26, %v1880_v4 }
  0xb4   :  { %v178_v35 = vpop.permute.xlu0 %177  ;;  %v162_v57 = vadd.f32 %v160_v31, %v98_v50  ;;  %v163_v58 = vadd.f32 %v161_v32, %v99_v52  ;;  %v2005_v32 = vld [vmem:[%s2610_s5 + $0xe] sm:$0x3] }
  0xb5   :  { %v176_v37 = vpop.permute.xlu1 %175 }
  0xb6   :  { %1137 = vperm.xlu1 %1556, %v1528_v34   ;;  %v180_v45 = vsel %vm179_vm2, %v176_v37, %v178_v35  ;;  %v181_v46 = vsel %vm179_vm2, %v178_v35, %v176_v37  ;;  %v368_v37 = vrot.slane %v1991_v25, %v1882_v5 }
  0xb7   :  { %v1952_v53 = vmul.f32 %v188_v42, %v181_v46  ;;  %v1954_v51 = vmul.f32 %v192_v43, %v180_v45  ;;  %v80_v45 = vmul.f32 %v1859_v55, %v72_v48  ;;  %v81_v46 = vmul.f32 %v1859_v55, %v73_v49 }
  0xb8   :  { %v1944_v44 = vpop.permute.xlu0 %212 }
  0xb9   :  { %v1950_v47 = vpop.permute.xlu1 %201  ;;  %v216_v55 = vmul.f32 %v1944_v44, %v1954_v51 }
  0xbc   :  { %v1956_v54 = vpop.permute.xlu0 %234 }
  0xbd   :  { %v224_v56 = vpop.permute.xlu1 %223  ;;  %v237_v49 = vmul.f32 %v1956_v54, %v1952_v53 }
  0xbe   :  { %v226_v59 = vmul.f32 %v224_v56, %v1952_v53  ;;  %v227_v61 = vmul.f32 %v224_v56, %v1954_v51 }
  0xc0   :  { %v1960_v62 = vadd.f32 %v226_v59, %v162_v57  ;;  %v1962_v1 = vadd.f32 %v227_v61, %v163_v58  ;;  %v244_v7 = vpop.permute.xlu0 %243  ;;  %v107_v57 = vmul.f32 %v1884_v6, %v72_v48  ;;  %v151_v58 = vadd.f32 %v1905_v20, %v89_v40  ;;  %v2050_v6 = vld [vmem:[%s2610_s5 + $0x10] sm:$0x3] }
  0xc1   :  { %v242_v8 = vpop.permute.xlu1 %241  ;;  %v152_v59 = vadd.f32 %v1907_v21, %v90_v41  ;;  %v205_v48 = vmul.f32 %v1950_v47, %v1954_v51  ;;  %v140_v20 = vadd.f32 %v1909_v23, %v80_v45  ;;  %v141_v21 = vadd.f32 %v1911_v24, %v81_v46 }
  0xc2   :  { %v246_v33 = vsel %vm245_vm3, %v242_v8, %v244_v7  ;;  %v247_v34 = vsel %vm245_vm3, %v244_v7, %v242_v8  ;;  %v215_v7 = vmul.f32 %v1944_v44, %v1952_v53  ;;  %v204_v8 = vmul.f32 %v1950_v47, %v1952_v53 }
  0xc3   :  { %v261_v50 = vmul.f32 %v254_v27, %v247_v34  ;;  %v262_v52 = vmul.f32 %v258_v30, %v246_v33  ;;  %v238_v44 = vmul.f32 %v1956_v54, %v1954_v51  ;;  %v173_v34 = vadd.f32 %v1919_v28, %v107_v57 }
  0xc4   :  { %v279_v63 = vpop.permute.xlu0 %278  ;;  %v174_v23 = vadd.f32 %v1921_v29, %v108_v60  ;;  %v566_v53 = vrot.slane %v2050_v6, %v1882_v5  ;;  %v217_v51 = vadd.f32 %v215_v7, %v151_v58  ;;  %v218_v54 = vadd.f32 %v216_v55, %v152_v59 }
  0xc5   :  { %v268_v9 = vpop.permute.xlu1 %267  ;;  %v281_v19 = vmul.f32 %v279_v63, %v261_v50  ;;  %v282_v27 = vmul.f32 %v279_v63, %v262_v52  ;;  %v206_v63 = vadd.f32 %v204_v8, %v140_v20  ;;  %v207_v41 = vadd.f32 %v205_v48, %v141_v21 }
  0xc6   :  { %v270_v30 = vmul.f32 %v268_v9, %v261_v50  ;;  %v271_v47 = vmul.f32 %v268_v9, %v262_v52  ;;  %v239_v45 = vadd.f32 %v237_v49, %v173_v34  ;;  %v240_v9 = vadd.f32 %v238_v44, %v174_v23 }
  0xc7   :  { %v660_v46 = vstv %s2028_s7  ;;  %v636_v28 = vstv %s2030_s1  ;;  %v283_v57 = vadd.f32 %v281_v19, %v217_v51  ;;  %v284_v29 = vadd.f32 %v282_v27, %v218_v54 }
  0xc8   :  { %v1964_v10 = vpop.permute.xlu0 %300  ;;  %v272_v60 = vadd.f32 %v270_v30, %v206_v63  ;;  %v273_v43 = vadd.f32 %v271_v47, %v207_v41 }
  0xc9   :  { %v1966_v11 = vpop.permute.xlu1 %289  ;;  %v303_v24 = vmul.f32 %v1964_v10, %v261_v50  ;;  %v304_v39 = vmul.f32 %v1964_v10, %v262_v52 }
  0xca   :  { %v292_v55 = vmul.f32 %v1966_v11, %v261_v50  ;;  %v293_v8 = vmul.f32 %v1966_v11, %v262_v52 }
  0xcb   :  { %v305_v49 = vadd.f32 %v303_v24, %v239_v45  ;;  %v306_v44 = vadd.f32 %v304_v39, %v240_v9  ;;  %v2619_v39 = vrot.slane %v1996_v26, %v1882_v5 }
  0xcc   :  { %v1968_v12 = vpop.permute.xlu0 %322  ;;  %v294_v27 = vadd.f32 %v292_v55, %v1960_v62  ;;  %v295_v25 = vadd.f32 %v293_v8, %v1962_v1  ;;  %v2620_v8 = vrot.slane %v2005_v32, %v1880_v4 }
  0xcd   :  { %v1970_v13 = vpop.permute.xlu1 %311  ;;  %v325_v48 = vmul.f32 %v1968_v12, %v1668_v0  ;;  %v326_v10 = vmul.f32 %v1968_v12, %v1678_v3 }
  0xce   :  { %v314_v20 = vmul.f32 %v1970_v13, %v1668_v0  ;;  %v315_v21 = vmul.f32 %v1970_v13, %v1678_v3 }
  0xcf   :  { %v328_v30 = vadd.f32 %v326_v10, %v284_v29 }
  0xd0   :  { %v1972_v14 = vpop.permute.xlu0 %344  ;;  %v316_v47 = vadd.f32 %v314_v20, %v272_v60  ;;  %v317_v34 = vadd.f32 %v315_v21, %v273_v43 }
  0xd1   :  { %v1974_v15 = vpop.permute.xlu1 %333 }
  0xd2   :  { %v337_v19 = vmul.f32 %v1974_v15, %v1678_v3 }
  0xd4   :  { %v1976_v16 = vpop.permute.xlu0 %353  ;;  %v339_v24 = vadd.f32 %v337_v19, %v295_v25 }
  0xd5   :  { %v1978_v17 = vpop.permute.xlu1 %351 }
  0xd6   :  { %v356_v58 = vsel %vm355_vm4, %v1978_v17, %v1976_v16  ;;  %v357_v59 = vsel %vm355_vm4, %v1976_v16, %v1978_v17  ;;  %v347_v16 = vmul.f32 %v1972_v14, %v1668_v0  ;;  %v348_v17 = vmul.f32 %v1972_v14, %v1678_v3 }
  0xd7   :  { %v371_v11 = vmul.f32 %v364_v36, %v356_v58  ;;  %v372_v12 = vmul.f32 %v368_v37, %v357_v59  ;;  %v336_v14 = vmul.f32 %v1974_v15, %v1668_v0  ;;  %v327_v37 = vadd.f32 %v325_v48, %v283_v57 }
  0xd8   :  { %v1980_v18 = vpop.permute.xlu0 %388  ;;  %v349_v3 = vadd.f32 %v347_v16, %v305_v49  ;;  %v350_v15 = vadd.f32 %v348_v17, %v306_v44 }
  0xd9   :  { %v1985_v22 = vpop.permute.xlu1 %377  ;;  %v391_v62 = vmul.f32 %v1980_v18, %v371_v11  ;;  %v392_v1 = vmul.f32 %v1980_v18, %v372_v12  ;;  %v338_v23 = vadd.f32 %v336_v14, %v294_v27 }
  0xda   :  { %v380_v43 = vmul.f32 %v1985_v22, %v371_v11  ;;  %v381_v51 = vmul.f32 %v1985_v22, %v372_v12 }
  0xdb   :  { %v393_v22 = vadd.f32 %v391_v62, %v327_v37  ;;  %v394_v29 = vadd.f32 %v392_v1, %v328_v30 }
  0xdc   :  { %v2000_v31 = vpop.permute.xlu0 %410  ;;  %v382_v21 = vadd.f32 %v380_v43, %v316_v47 }
  0xdd   :  { %v2011_v35 = vpop.permute.xlu1 %399  ;;  %v413_v54 = vmul.f32 %v2000_v31, %v371_v11  ;;  %v414_v26 = vmul.f32 %v2000_v31, %v372_v12 }
  0xde   :  { %v402_v18 = vmul.f32 %v2011_v35, %v371_v11  ;;  %v403_v45 = vmul.f32 %v2011_v35, %v372_v12  ;;  %v2621_v35 = vrot.slane %v2005_v32, %v1882_v5 }
  0xdf   :  { %v415_v16 = vadd.f32 %v413_v54, %v349_v3  ;;  %v416_v17 = vadd.f32 %v414_v26, %v350_v15 }
  0xe0   :  { %v420_v56 = vpop.permute.xlu0 %419  ;;  %v404_v11 = vadd.f32 %v402_v18, %v338_v23  ;;  %v405_v12 = vadd.f32 %v403_v45, %v339_v24 }
  0xe1   :  { %v418_v61 = vpop.permute.xlu1 %417 }
  0xe2   :  { %v422_v50 = vsel %vm421_vm5, %v418_v61, %v420_v56  ;;  %v423_v13 = vsel %vm421_vm5, %v420_v56, %v418_v61 }
  0xe3   :  { %v437_v56 = vmul.f32 %v430_v38, %v422_v50  ;;  %v438_v0 = vmul.f32 %v2619_v39, %v423_v13 }
  0xe4   :  { %v2058_v33 = vpop.permute.xlu0 %454 }
  0xe5   :  { %v2062_v40 = vpop.permute.xlu1 %443  ;;  %v457_v9 = vmul.f32 %v2058_v33, %v437_v56  ;;  %v458_v57 = vmul.f32 %v2058_v33, %v438_v0  ;;  %v383_v33 = vadd.f32 %v381_v51, %v317_v34 }
  0xe6   :  { %v446_v60 = vmul.f32 %v2062_v40, %v437_v56  ;;  %v447_v31 = vmul.f32 %v2062_v40, %v438_v0 }
  0xe7   :  { %v459_v50 = vadd.f32 %v457_v9, %v393_v22  ;;  %v460_v40 = vadd.f32 %v458_v57, %v394_v29 }
  0xe8   :  { %v477_v42 = vpop.permute.xlu0 %476  ;;  %v448_v13 = vadd.f32 %v446_v60, %v382_v21 }
  0xe9   :  { %v2081_v7 = vpop.permute.xlu1 %465  ;;  %v479_v59 = vmul.f32 %v477_v42, %v437_v56  ;;  %v480_v55 = vmul.f32 %v477_v42, %v438_v0 }
  0xea   :  { %v468_v42 = vmul.f32 %v2081_v7, %v437_v56  ;;  %v469_v49 = vmul.f32 %v2081_v7, %v438_v0  ;;  %v2622_v56 = vrot.slane %v2050_v6, %v1880_v4 }
  0xeb   :  { %v481_v14 = vadd.f32 %v479_v59, %v415_v16  ;;  %v482_v19 = vadd.f32 %v480_v55, %v416_v17 }
  0xec   :  { %v486_v52 = vpop.permute.xlu0 %485  ;;  %v470_v3 = vadd.f32 %v468_v42, %v404_v11  ;;  %v471_v15 = vadd.f32 %v469_v49, %v405_v12 }
  0xed   :  { %v484_v36 = vpop.permute.xlu1 %483 }
  0xee   :  { %v488_v63 = vsel %vm487_vm6, %v484_v36, %v486_v52  ;;  %v489_v41 = vsel %vm487_vm6, %v486_v52, %v484_v36  ;;  %v449_v52 = vadd.f32 %v447_v31, %v383_v33 }
  0xef   :  { %v503_v48 = vmul.f32 %v2620_v8, %v488_v63  ;;  %v504_v10 = vmul.f32 %v2621_v35, %v489_v41 }
  0xf0   :  { %v521_v61 = vpop.permute.xlu0 %520 }
  0xf1   :  { %v510_v38 = vpop.permute.xlu1 %509  ;;  %v523_v32 = vmul.f32 %v521_v61, %v503_v48  ;;  %v524_v36 = vmul.f32 %v521_v61, %v504_v10 }
  0xf2   :  { %v512_v25 = vmul.f32 %v510_v38, %v503_v48  ;;  %v513_v37 = vmul.f32 %v510_v38, %v504_v10 }
  0xf3   :  { %v525_v23 = vadd.f32 %v523_v32, %v459_v50  ;;  %v526_v24 = vadd.f32 %v524_v36, %v460_v40 }
  0xf4   :  { %v543_v58 = vpop.permute.xlu0 %542  ;;  %v514_v54 = vadd.f32 %v512_v25, %v448_v13  ;;  %v515_v26 = vadd.f32 %v513_v37, %v449_v52 }
  0xf5   :  { %v532_v20 = vpop.permute.xlu1 %531  ;;  %v545_v34 = vmul.f32 %v543_v58, %v503_v48  ;;  %v546_v39 = vmul.f32 %v543_v58, %v504_v10 }
  0xf6   :  { %v534_v62 = vmul.f32 %v532_v20, %v503_v48  ;;  %v535_v1 = vmul.f32 %v532_v20, %v504_v10 }
  0xf7   :  { %v547_v18 = vadd.f32 %v545_v34, %v481_v14  ;;  %v548_v45 = vadd.f32 %v546_v39, %v482_v19 }
  0xf8   :  { %v552_v44 = vpop.permute.xlu0 %551  ;;  %v536_v6 = vadd.f32 %v534_v62, %v470_v3 }
  0xf9   :  { %v550_v27 = vpop.permute.xlu1 %549 }
  0xfa   :  { %v554_v30 = vsel %vm553_vm7, %v550_v27, %v552_v44  ;;  %v555_v47 = vsel %vm553_vm7, %v552_v44, %v550_v27 }
  0xfb   :  { %v569_v7 = vmul.f32 %v2622_v56, %v554_v30  ;;  %v570_v0 = vmul.f32 %v566_v53, %v555_v47  ;;  %v537_v53 = vadd.f32 %v535_v1, %v471_v15 }
  0xfc   :  { %v587_v61 = vpop.permute.xlu0 %586 }
  0xfd   :  { %v589_v43 = vmul.f32 %v587_v61, %v569_v7  ;;  %v590_v51 = vmul.f32 %v587_v61, %v570_v0  ;;  %v576_v38 = vpop.permute.xlu1 %575 }
  0xfe   :  { %v578_v63 = vmul.f32 %v576_v38, %v569_v7  ;;  %v579_v41 = vmul.f32 %v576_v38, %v570_v0 }
  0xff   :  { %v591_v9 = vadd.f32 %v589_v43, %v525_v23  ;;  %v592_v57 = vadd.f32 %v590_v51, %v526_v24 }
 0x100   :  { %v580_v22 = vadd.f32 %v578_v63, %v514_v54  ;;  %v581_v29 = vadd.f32 %v579_v41, %v515_v26  ;;  %v609_v60 = vpop.permute.xlu0 %608 }
 0x101   :  { %v641_v31 = vrot.slane %v591_v9, 2  ;;  %v642_v58 = vrot.slane %v592_v57, 2  ;;  %v647_v59 = vrot.slane %v591_v9, 4  ;;  %v648_v55 = vrot.slane %v592_v57, 4  ;;  %v598_v17 = vpop.permute.xlu1 %597 }
 0x102   :  { %v653_v8 = vrot.slane %v591_v9, 6  ;;  %v654_v48 = vrot.slane %v592_v57, 6  ;;  %v617_v35 = vrot.slane %v580_v22, 2  ;;  %v618_v10 = vrot.slane %v581_v29, 2 }
 0x103   :  { %v645_v20 = vadd.f32 %v641_v31, %v591_v9  ;;  %v646_v21 = vadd.f32 %v642_v58, %v592_v57  ;;  %v623_v33 = vrot.slane %v580_v22, 4  ;;  %v624_v16 = vrot.slane %v581_v29, 4 }
 0x104   :  { %v621_v11 = vadd.f32 %v617_v35, %v580_v22  ;;  %v622_v12 = vadd.f32 %v618_v10, %v581_v29  ;;  %v629_v50 = vrot.slane %v580_v22, 6  ;;  %v630_v40 = vrot.slane %v581_v29, 6  ;;  %v2154_v13 = vpop.permute.xlu0 %779 }
 0x105   :  { %v651_v52 = vadd.f32 %v647_v59, %v645_v20  ;;  %v652_v42 = vadd.f32 %v648_v55, %v646_v21  ;;  %v611_v49 = vmul.f32 %v609_v60, %v569_v7  ;;  %v612_v44 = vmul.f32 %v609_v60, %v570_v0 }
 0x106   :  { %v627_v14 = vadd.f32 %v623_v33, %v621_v11  ;;  %v628_v19 = vadd.f32 %v624_v16, %v622_v12  ;;  %v600_v32 = vmul.f32 %v598_v17, %v569_v7  ;;  %v601_v36 = vmul.f32 %v598_v17, %v570_v0 }
 0x107   :  { %v657_v27 = vadd.f32 %v653_v8, %v651_v52  ;;  %v658_v25 = vadd.f32 %v654_v48, %v652_v42  ;;  %v613_v37 = vadd.f32 %v611_v49, %v547_v18  ;;  %v614_v30 = vadd.f32 %v612_v44, %v548_v45 }
 0x108   :  { %v633_v47 = vadd.f32 %v629_v50, %v627_v14  ;;  %v634_v34 = vadd.f32 %v630_v40, %v628_v19  ;;  %v602_v39 = vadd.f32 %v600_v32, %v536_v6  ;;  %v603_v56 = vadd.f32 %v601_v36, %v537_v53  ;;  %v2158_v3 = vpop.permute.xlu0 %797 }
 0x109   :  { %v661_v15 = vadd.f32 %v660_v46, %v657_v27  ;;  %v662_v62 = vadd.f32 %v660_v46, %v658_v25  ;;  %v689_v1 = vrot.slane %v613_v37, 2  ;;  %v690_v61 = vrot.slane %v614_v30, 2 }
 0x10a   :  { %v637_v7 = vadd.f32 %v636_v28, %v633_v47  ;;  %v638_v0 = vadd.f32 %v636_v28, %v634_v34  ;;  %v695_v23 = vrot.slane %v613_v37, 4  ;;  %v696_v24 = vrot.slane %v614_v30, 4 }
 0x10b   :  { %v715_v43 = vmax.f32 %v661_v15, 0.0  ;;  %v716_v51 = vmax.f32 %v662_v62, 0.0  ;;  %v693_v38 = vadd.f32 %v689_v1, %v613_v37  ;;  %v694_v54 = vadd.f32 %v690_v61, %v614_v30  ;;  %v1529_v62 = vld [vmem:[%s2608_s3 + $0xd0] sm:$0xff]  ;;  %v1530_v1 = vld [vmem:[%s2608_s3 + $0xd8] sm:$0xff]  ;;  %v1527_v61 = vld [vmem:[%s2608_s3 + $0xc0] sm:$0xff] }
 0x10c   :  { %v711_v26 = vmax.f32 %v637_v7, 0.0  ;;  %v712_v63 = vmax.f32 %v638_v0, 0.0  ;;  %v701_v41 = vrot.slane %v613_v37, 6  ;;  %v702_v18 = vrot.slane %v614_v30, 6  ;;  %v2170_v46 = vpop.permute.xlu0 %837  ;;  %v1533_v7 = vld [vmem:[%s2608_s3 + $0xe8] sm:$0xff]  ;;  %v1534_v0 = vld [vmem:[%s2608_s3 + $0xf0] sm:$0xff] }
 0x10d   :  { %v719_v45 = vrot.slane %v715_v43, 6  ;;  %v720_v9 = vrot.slane %v716_v51, 6  ;;  %v699_v57 = vadd.f32 %v695_v23, %v693_v38  ;;  %v700_v6 = vadd.f32 %v696_v24, %v694_v54  ;;  %v1535_v23 = vld [vmem:[%s2608_s3 + $0xf8] sm:$0xff]  ;;  %v1532_v24 = vld [vmem:[%s2608_s3 + $0xe0] sm:$0xff]  ;;  %v1538_v43 = vld [vmem:[%s2608_s3 + $0x108] sm:$0xff]  ;;  %v2250_v54 = vpop.permute.xlu1 %770 }
 0x10e   :  { %713 = vst [vmem:[#allocation2] sm:$0x3] %v711_v26  ;;  %714 = vst [vmem:[#allocation2 + $0x8] sm:$0x3] %v712_v63  ;;  %v708_v28 = vstv %s2156_s13  ;;  %v665_v53 = vrot.slane %v602_v39, 2  ;;  %v666_v22 = vrot.slane %v603_v56, 2  ;;  %v684_v11 = vstv %s2168_s14 }
 0x10f   :  { %723 = vst [vmem:[#allocation2] sm:$0xc] %v719_v45  ;;  %724 = vst [vmem:[#allocation2 + $0x8] sm:$0xc] %v720_v9  ;;  %v705_v29 = vadd.f32 %v701_v41, %v699_v57  ;;  %v706_v60 = vadd.f32 %v702_v18, %v700_v6  ;;  %v671_v59 = vrot.slane %v602_v39, 4  ;;  %v672_v55 = vrot.slane %v603_v56, 4 }
 0x110   :  { %v669_v31 = vadd.f32 %v665_v53, %v602_v39  ;;  %v670_v58 = vadd.f32 %v666_v22, %v603_v56  ;;  %v2173_v8 = vpop.permute.xlu0 %859  ;;  %v677_v21 = vrot.slane %v602_v39, 6  ;;  %v678_v33 = vrot.slane %v603_v56, 6  ;;  %v1539_v51 = vld [vmem:[%s2608_s3 + $0x110] sm:$0xff]  ;;  %v1540_v38 = vld [vmem:[%s2608_s3 + $0x118] sm:$0xff]  ;;  %v1537_v63 = vld [vmem:[%s2608_s3 + $0x100] sm:$0xff] }
 0x111   :  { %v709_v48 = vadd.f32 %v708_v28, %v705_v29  ;;  %v710_v35 = vadd.f32 %v708_v28, %v706_v60  ;;  %v789_v26 = vpop.permute.xlu1 %788 }
 0x112   :  { %v675_v10 = vadd.f32 %v671_v59, %v669_v31  ;;  %v676_v20 = vadd.f32 %v672_v55, %v670_v58 }
 0x113   :  { %v735_v16 = vmax.f32 %v709_v48, 0.0  ;;  %v736_v17 = vmax.f32 %v710_v35, 0.0  ;;  %v1502_v35 = vld [vmem:[%s2610_s5 + $0x2] sm:$0x3] }
 0x114   :  { %v681_v12 = vadd.f32 %v677_v21, %v675_v10  ;;  %v682_v50 = vadd.f32 %v678_v33, %v676_v20  ;;  %v2176_v40 = vpop.permute.xlu0 %901  ;;  %v753_v20 = vld [vmem:[%s2610_s5] sm:$0x3]  ;;  %v813_v21 = vrot.slane %v1502_v35, %v1880_v4  ;;  %v817_v33 = vrot.slane %v1502_v35, %v1882_v5 }
 0x115   :  { %v739_v52 = vrot.slane %v735_v16, 2  ;;  %v740_v42 = vrot.slane %v736_v17, 2  ;;  %v2261_v41 = vpop.permute.xlu1 %826  ;;  %v1507_v16 = vld [vmem:[%s2610_s5 + $0x4] sm:$0x3]  ;;  %v758_v17 = vrot.slane %v753_v20, %v1880_v4 }
 0x116   :  { %v685_v49 = vadd.f32 %v684_v11, %v681_v12  ;;  %v686_v44 = vadd.f32 %v684_v11, %v682_v50  ;;  %v762_v11 = vrot.slane %v753_v20, %v1882_v5 }
 0x117   :  { %743 = vst [vmem:[#allocation2] sm:$0xc0] %v739_v52  ;;  %744 = vst [vmem:[#allocation2 + $0x8] sm:$0xc0] %v740_v42 }
 0x118   :  { %v725_v14 = vmax.f32 %v685_v49, 0.0  ;;  %v726_v19 = vmax.f32 %v686_v44, 0.0  ;;  %v2178_v32 = vpop.permute.xlu0 %923 }
 0x119   :  { %v849_v18 = vpop.permute.xlu1 %848 }
 0x11a   :  { %v729_v36 = vrot.slane %v725_v14, 4  ;;  %v730_v27 = vrot.slane %v726_v19, 4  ;;  %v877_v14 = vrot.slane %v1507_v16, %v1880_v4  ;;  %v881_v19 = vrot.slane %v1507_v16, %v1882_v5 }
 0x11c   :  { %733 = vst [vmem:[#allocation2] sm:$0x30] %v729_v36  ;;  %734 = vst [vmem:[#allocation2 + $0x8] sm:$0x30] %v730_v27  ;;  %v2180_v25 = vpop.permute.xlu0 %965  ;;  %v1512_v36 = vld [vmem:[%s2610_s5 + $0x6] sm:$0x3] }
 0x11d   :  { %v2265_v45 = vpop.permute.xlu1 %890 }
 0x120   :  { %v2182_v37 = vpop.permute.xlu0 %987 }
 0x121   :  { %v913_v9 = vpop.permute.xlu1 %912 }
 0x123   :  { %v2184_v30 = vld [vmem:[#allocation2 + $0x8] sm:$0xff]  ;;  %v2186_v47 = vld [vmem:[#allocation2] sm:$0xff] }
 0x124   :  { %749 = vrot.lane.b32.xlu0 %v2184_v30, %s1615_s9  ;;  %747 = vrot.lane.b32.xlu1 %v2186_v47, %s1615_s9  ;;  %v2192_v34 = vpop.permute.xlu0 %1009 }
 0x125   :  { %v2267_v57 = vpop.permute.xlu1 %954 }
 0x128   :  { %804 = vrot.lane.b32.xlu0 %v2184_v30, %s1616_s18  ;;  %802 = vrot.lane.b32.xlu1 %v2186_v47, %s1616_s18  ;;  %v1032_v39 = vpop.permute.xlu0 %1031 }
 0x129   :  { %v2199_v56 = vmul.f32 %v1032_v39, %v2186_v47  ;;  %v2202_v15 = vmul.f32 %v1032_v39, %v2184_v30  ;;  %v977_v6 = vpop.permute.xlu1 %976 }
 0x12c   :  { %868 = vrot.lane.b32.xlu0 %v2184_v30, %s1617_s27  ;;  %866 = vrot.lane.b32.xlu1 %v2186_v47, %s1617_s27  ;;  %v2273_v29 = vpop.permute.xlu0 %1084  ;;  %s2355_s27 = sld [smem:[#allocation6 + $0x2]] }
 0x12d   :  { %v2269_v28 = vpop.permute.xlu1 %998 }
 0x130   :  { %932 = vrot.lane.b32.xlu0 %v2184_v30, %s1618_s11  ;;  %930 = vrot.lane.b32.xlu1 %v2186_v47, %s1618_s11  ;;  %v2277_v31 = vpop.permute.xlu0 %1062 }
 0x131   :  { %v1021_v53 = vpop.permute.xlu1 %1020 }
 0x134   :  { %1148 = vperm.xlu0 %1557, %v1529_v62   ;;  %1159 = vperm.xlu1 %1556, %v1530_v1  }
 0x135   :  { %v2271_v22 = vpop.permute.xlu1 %1073 }
 0x138   :  { %1038 = vrot.lane.b32.xlu0 %v2186_v47, %s1619_s2  ;;  %1040 = vrot.lane.b32.xlu1 %v2184_v30, %s1619_s2 }
 0x139   :  { %v2275_v60 = vpop.permute.xlu1 %1095 }
 0x13c   :  { %1126 = vperm.xlu0 %1557, %v1527_v61   ;;  %1201 = vperm.xlu1 %1556, %v1533_v7  }
 0x13d   :  { %v2279_v58 = vpop.permute.xlu1 %1137 }
 0x140   :  { %1212 = vperm.xlu0 %1557, %v1534_v0   ;;  %1223 = vperm.xlu1 %1556, %v1535_v23  }
 0x144   :  { %1102 = vrot.lane.b32.xlu0 %v2186_v47, %s1620_s15  ;;  %1104 = vrot.lane.b32.xlu1 %v2184_v30, %s1620_s15 }
 0x148   :  { %1190 = vperm.xlu0 %1557, %v1532_v24   ;;  %1265 = vperm.xlu1 %1556, %v1538_v43   ;;  %v941_v24 = vrot.slane %v1512_v36, %v1880_v4  ;;  %v945_v43 = vrot.slane %v1512_v36, %v1882_v5 }
 0x14c   :  { %1276 = vperm.xlu0 %1557, %v1539_v51   ;;  %1287 = vperm.xlu1 %1556, %v1540_v38  }
 0x150   :  { %1166 = vrot.lane.b32.xlu0 %v2186_v47, %s1621_s25  ;;  %1168 = vrot.lane.b32.xlu1 %v2184_v30, %s1621_s25 }
 0x154   :  { %1254 = vperm.xlu0 %1557, %v1537_v63   ;;  %1230 = vrot.lane.b32.xlu1 %v2186_v47, %s1622_s12 }
 0x158   :  { %1232 = vrot.lane.b32.xlu0 %v2184_v30, %s1622_s12 }
 0x196   :  { %v748_v59 = vpop.permute.xlu1 %747  ;;  %v750_v55 = vpop.permute.xlu0 %749 }
 0x197   :  { %v751_v49 = vsel %vm57_vm1, %v748_v59, %v750_v55  ;;  %v752_v44 = vsel %vm57_vm1, %v750_v55, %v748_v59 }
 0x198   :  { %v2311_v62 = vmul.f32 %v758_v17, %v752_v44  ;;  %v2313_v1 = vmul.f32 %v762_v11, %v751_v49 }
 0x19a   :  { %v803_v48 = vpop.permute.xlu1 %802  ;;  %v805_v10 = vpop.permute.xlu0 %804  ;;  %v791_v35 = vmul.f32 %v789_v26, %v2311_v62 }
 0x19b   :  { %v806_v12 = vsel %vm113_vm0, %v803_v48, %v805_v10  ;;  %v807_v50 = vsel %vm113_vm0, %v805_v10, %v803_v48  ;;  %v792_v10 = vmul.f32 %v789_v26, %v2313_v1  ;;  %v1024_v26 = vmul.f32 %v1021_v53, %v2184_v30 }
 0x19c   :  { %v2307_v27 = vmul.f32 %v813_v21, %v807_v50  ;;  %v2309_v39 = vmul.f32 %v817_v33, %v806_v12 }
 0x19e   :  { %v867_v52 = vpop.permute.xlu1 %866  ;;  %v869_v42 = vpop.permute.xlu0 %868  ;;  %v851_v55 = vmul.f32 %v849_v18, %v2307_v27  ;;  %v852_v48 = vmul.f32 %v849_v18, %v2309_v39 }
 0x19f   :  { %v870_v0 = vsel %vm179_vm2, %v867_v52, %v869_v42  ;;  %v871_v23 = vsel %vm179_vm2, %v869_v42, %v867_v52  ;;  %v1023_v42 = vmul.f32 %v1021_v53, %v2186_v47  ;;  %v2362_v53 = vld [vmem:[%s2610_s5 + $0xa] sm:$0x3] }
 0x1a0   :  { %v2321_v51 = vmul.f32 %v877_v14, %v871_v23  ;;  %v2323_v38 = vmul.f32 %v881_v19, %v870_v0  ;;  %v853_v17 = vadd.f32 %v851_v55, %v791_v35  ;;  %v854_v11 = vadd.f32 %v852_v48, %v792_v10  ;;  %v2372_v0 = vld [vmem:[%s2610_s5 + $0xe] sm:$0x3] }
 0x1a1   :  { %v2376_v23 = vmul.f32 %v2192_v34, %v2186_v47  ;;  %v1049_v55 = vrot.slane %v2362_v53, %v1880_v4 }
 0x1a2   :  { %v931_v61 = vpop.permute.xlu1 %930  ;;  %v933_v7 = vpop.permute.xlu0 %932  ;;  %v915_v20 = vmul.f32 %v913_v9, %v2321_v51  ;;  %v916_v21 = vmul.f32 %v913_v9, %v2323_v38 }
 0x1a3   :  { %v934_v63 = vsel %vm245_vm3, %v931_v61, %v933_v7  ;;  %v935_v59 = vsel %vm245_vm3, %v933_v7, %v931_v61  ;;  %v2367_v7 = vld [vmem:[%s2610_s5 + $0xc] sm:$0x3] }
 0x1a4   :  { %v2335_v33 = vmul.f32 %v941_v24, %v935_v59  ;;  %v2337_v16 = vmul.f32 %v945_v43, %v934_v63  ;;  %v917_v12 = vadd.f32 %v915_v20, %v853_v17  ;;  %v918_v50 = vadd.f32 %v916_v21, %v854_v11  ;;  %v2385_v43 = vld [vmem:[%s2610_s5 + $0x10] sm:$0x3] }
 0x1a5   :  { %v2380_v24 = vmul.f32 %v2192_v34, %v2184_v30  ;;  %2625 = vst [vmem:[#allocation14_spill] sm:$0xff] %v2385_v43  ;;  %v2389_v63 = vmul.f32 %v2269_v28, %v2186_v47  ;;  %v2393_v59 = vmul.f32 %v2269_v28, %v2184_v30  ;;  %v1053_v34 = vrot.slane %v2362_v53, %v1882_v5  ;;  %v2436_v53 = vld [vmem:[%s2605_s0 + $0x8] sm:$0xff] }
 0x1a6   :  { %v979_v52 = vmul.f32 %v977_v6, %v2335_v33  ;;  %v980_v18 = vmul.f32 %v977_v6, %v2337_v16  ;;  %v773_v11 = vmul.f32 %v2250_v54, %v2311_v62  ;;  %v800_v21 = vmul.f32 %v2158_v3, %v2311_v62 }
 0x1a7   :  { %v862_v20 = vmul.f32 %v2173_v8, %v2307_v27  ;;  %v893_v47 = vmul.f32 %v2265_v45, %v2321_v51  ;;  %v894_v43 = vmul.f32 %v2265_v45, %v2323_v38 }
 0x1a8   :  { %v981_v49 = vadd.f32 %v979_v52, %v917_v12  ;;  %v982_v44 = vadd.f32 %v980_v18, %v918_v50  ;;  %v829_v12 = vmul.f32 %v2261_v41, %v2307_v27  ;;  %v830_v50 = vmul.f32 %v2261_v41, %v2309_v39 }
 0x1a9   :  { %v840_v52 = vmul.f32 %v2170_v46, %v2307_v27  ;;  %v841_v18 = vmul.f32 %v2170_v46, %v2309_v39  ;;  %v774_v46 = vmul.f32 %v2250_v54, %v2313_v1  ;;  %v801_v41 = vmul.f32 %v2158_v3, %v2313_v1 }
 0x1aa   :  { %v2343_v14 = vadd.f32 %v1023_v42, %v981_v49  ;;  %v2345_v9 = vadd.f32 %v1024_v26, %v982_v44  ;;  %v2430_v49 = vld [vmem:[%s2605_s0] sm:$0xff]  ;;  %v782_v26 = vmul.f32 %v2154_v13, %v2311_v62  ;;  %v783_v42 = vmul.f32 %v2154_v13, %v2313_v1  ;;  %s1623_s0 = smov [#allocation8]  }
 0x1ab   :  { %v863_v54 = vmul.f32 %v2173_v8, %v2309_v39  ;;  %v831_v28 = vadd.f32 %v829_v12, %v773_v11  ;;  %v832_v30 = vadd.f32 %v830_v50, %v774_v46  ;;  %v904_v62 = vmul.f32 %v2176_v40, %v2321_v51  ;;  %s1444_s30 = sshll.u32 %s1623_s0, 4  ;;  %s1445_s30 = int_to_ptr.vmem [resolvable:$true] %s1444_s30 }
 0x1ac   :  { %v842_v10 = vadd.f32 %v840_v52, %v782_v26  ;;  %v843_v13 = vadd.f32 %v841_v18, %v783_v42  ;;  %v905_v3 = vmul.f32 %v2176_v40, %v2323_v38  ;;  %v926_v27 = vmul.f32 %v2178_v32, %v2321_v51  ;;  %s1584_s7 = scalar_lea.vmem %s1445_s30, 256  ;;  %p1589_p11 = scmp.lt.s32.totalorder %s1445_s30, %s1445_s30 }
 0x1ad   :  { %v927_v8 = vmul.f32 %v2178_v32, %v2323_v38  ;;  %v957_v39 = vmul.f32 %v2267_v57, %v2335_v33  ;;  %v958_v1 = vmul.f32 %v2267_v57, %v2337_v16  ;;  %v968_v12 = vmul.f32 %v2180_v25, %v2335_v33  ;;  %p1585_p10 = scmp.ne.s32.totalorder %s1445_s30, %s1584_s7  ;;  %p1590_p12 = scmp.lt.s32.totalorder %s1584_s7, %s1584_s7 }
 0x1ae   :  { %v969_v40 = vmul.f32 %v2180_v25, %v2337_v16  ;;  %v864_v38 = vadd.f32 %v862_v20, %v800_v21  ;;  %v865_v50 = vadd.f32 %v863_v54, %v801_v41  ;;  %v990_v52 = vmul.f32 %v2182_v37, %v2335_v33 }
 0x1af   :  { %v991_v57 = vmul.f32 %v2182_v37, %v2337_v16  ;;  %v895_v18 = vadd.f32 %v893_v47, %v831_v28  ;;  %v896_v42 = vadd.f32 %v894_v43, %v832_v30  ;;  %v906_v26 = vadd.f32 %v904_v62, %v842_v10  ;;  %p1591_p13 = por %p1590_p12, %p1589_p11 }
 0x1b0   :  { %v907_v46 = vadd.f32 %v905_v3, %v843_v13  ;;  %v929_v25 = vadd.f32 %v927_v8, %v865_v50  ;;  %v1410_v43 = vrot.slane %v2430_v49, 4  ;;  %v1425_v47 = vrot.slane %v2436_v53, 6 }
 0x1b1   :  { %v970_v20 = vadd.f32 %v968_v12, %v906_v26  ;;  %p1592_p0 = pnand %p1591_p13, %p1585_p10 }
 0x1b2   :  { %v971_v21 = vadd.f32 %v969_v40, %v907_v46  ;;  %v993_v33 = vadd.f32 %v991_v57, %v929_v25  ;;  %v2632_v57 = vrot.slane %v2372_v0, %v1882_v5 }
 0x1b3   :  { %v2347_v19 = vpop.permute.xlu1 %1159  ;;  %v2349_v36 = vpop.permute.xlu0 %1148 }
 0x1b4   :  { %2623 = vst [vmem:[#allocation12_spill] sm:$0xff] %v2347_v19  ;;  %2624 = vst [vmem:[#allocation13_spill] sm:$0xff] %v2349_v36 }
 0x1b7   :  { %v1041_v6 = vpop.permute.xlu1 %1040  ;;  %v1039_v61 = vpop.permute.xlu0 %1038 }
 0x1b8   :  { %v1042_v51 = vsel %vm355_vm4, %v1039_v61, %v1041_v6  ;;  %v1043_v32 = vsel %vm355_vm4, %v1041_v6, %v1039_v61  ;;  %v959_v6 = vadd.f32 %v957_v39, %v895_v18  ;;  %v960_v61 = vadd.f32 %v958_v1, %v896_v42 }
 0x1b9   :  { %v2630_v39 = vrot.slane %v2367_v7, %v1882_v5  ;;  %v1014_v1 = vadd.f32 %v2376_v23, %v970_v20 }
 0x1ba   :  { %v1003_v62 = vadd.f32 %v2389_v63, %v959_v6  ;;  %v1004_v3 = vadd.f32 %v2393_v59, %v960_v61 }
 0x1bb   :  { %v2399_v48 = vpop.permute.xlu1 %1201  ;;  %v2401_v35 = vpop.permute.xlu0 %1126  ;;  %v2633_v25 = vld [vmem:[#allocation13_spill] sm:$0xff]  ;;  %v2634_v20 = vld [vmem:[#allocation12_spill] sm:$0xff] }
 0x1bc   :  { %2626 = vst [vmem:[#allocation15_spill] sm:$0xff] %v2399_v48  ;;  %v1057_v48 = vmul.f32 %v1053_v34, %v1043_v32  ;;  %v1424_v34 = vrot.slane %v2430_v49, 6 }
 0x1be   :  { %v1066_v30 = vmul.f32 %v2277_v31, %v1057_v48  ;;  %v1088_v59 = vmul.f32 %v2273_v29, %v1057_v48  ;;  %v1099_v40 = vmul.f32 %v2275_v60, %v1057_v48 }
 0x1bf   :  { %v2447_v44 = vpop.permute.xlu1 %1223  ;;  %v2449_v17 = vpop.permute.xlu0 %1212 }
 0x1c0   :  { %2627 = vst [vmem:[#allocation16_spill] sm:$0xff] %v2447_v44  ;;  %2628 = vst [vmem:[#allocation17_spill] sm:$0xff] %v2449_v17  ;;  %v928_v44 = vadd.f32 %v926_v27, %v864_v38  ;;  %v1056_v17 = vmul.f32 %v1049_v55, %v1042_v51  ;;  %v1411_v55 = vrot.slane %v2436_v53, 4  ;;  %v2629_v27 = vrot.slane %v2367_v7, %v1880_v4 }
 0x1c1   :  { %v1068_v32 = vadd.f32 %v1066_v30, %v1004_v3  ;;  %v1090_v42 = vadd.f32 %v1088_v59, %v2345_v9 }
 0x1c2   :  { %v992_v41 = vadd.f32 %v990_v52, %v928_v44  ;;  %v1065_v10 = vmul.f32 %v2277_v31, %v1056_v17  ;;  %v1076_v28 = vmul.f32 %v2271_v22, %v1056_v17  ;;  %v1077_v44 = vmul.f32 %v2271_v22, %v1057_v48 }
 0x1c3   :  { %v1105_v11 = vpop.permute.xlu1 %1104  ;;  %v1103_v45 = vpop.permute.xlu0 %1102  ;;  %v1015_v22 = vadd.f32 %v2380_v24, %v971_v21  ;;  %v1087_v63 = vmul.f32 %v2273_v29, %v1056_v17  ;;  %v1098_v12 = vmul.f32 %v2275_v60, %v1056_v17  ;;  %v2631_v48 = vrot.slane %v2372_v0, %v1880_v4 }
 0x1c4   :  { %v1106_v37 = vsel %vm421_vm5, %v1103_v45, %v1105_v11  ;;  %v1107_v16 = vsel %vm421_vm5, %v1105_v11, %v1103_v45  ;;  %v1036_v11 = vadd.f32 %v2199_v56, %v992_v41  ;;  %v1037_v45 = vadd.f32 %v2202_v15, %v993_v33 }
 0x1c5   :  { %v1120_v8 = vmul.f32 %v2629_v27, %v1106_v37  ;;  %v1121_v31 = vmul.f32 %v2630_v39, %v1107_v16  ;;  %v1067_v51 = vadd.f32 %v1065_v10, %v1003_v62  ;;  %v1078_v7 = vadd.f32 %v1076_v28, %v1014_v1 }
 0x1c6   :  { %v1079_v38 = vadd.f32 %v1077_v44, %v1015_v22  ;;  %v1100_v26 = vadd.f32 %v1098_v12, %v1036_v11  ;;  %v1101_v46 = vadd.f32 %v1099_v40, %v1037_v45 }
 0x1c7   :  { %v2487_v19 = vpop.permute.xlu1 %1265  ;;  %v1191_v36 = vpop.permute.xlu0 %1190  ;;  %v1129_v24 = vmul.f32 %v2401_v35, %v1120_v8  ;;  %v1130_v56 = vmul.f32 %v2401_v35, %v1121_v31  ;;  %v1140_v17 = vmul.f32 %v2279_v58, %v1120_v8  ;;  %v1141_v60 = vmul.f32 %v2279_v58, %v1121_v31  ;;  %v2636_v44 = vld [vmem:[#allocation17_spill] sm:$0xff]  ;;  %v2637_v27 = vld [vmem:[#allocation16_spill] sm:$0xff] }
 0x1c8   :  { %v1089_v35 = vadd.f32 %v1087_v63, %v2343_v14  ;;  %v1151_v6 = vmul.f32 %v2633_v25, %v1120_v8  ;;  %v1152_v61 = vmul.f32 %v2633_v25, %v1121_v31  ;;  %v1162_v58 = vmul.f32 %v2634_v20, %v1120_v8  ;;  %v2635_v14 = vld [vmem:[#allocation15_spill] sm:$0xff] }
 0x1c9   :  { %v1163_v21 = vmul.f32 %v2634_v20, %v1121_v31  ;;  %v1131_v33 = vadd.f32 %v1129_v24, %v1067_v51  ;;  %v1132_v37 = vadd.f32 %v1130_v56, %v1068_v32  ;;  %v1142_v10 = vadd.f32 %v1140_v17, %v1078_v7  ;;  %v2638_v7 = vld [vmem:[#allocation14_spill] sm:$0xff] }
 0x1ca   :  { %v1143_v30 = vadd.f32 %v1141_v60, %v1079_v38  ;;  %v1153_v31 = vadd.f32 %v1151_v6, %v1089_v35  ;;  %v1154_v1 = vadd.f32 %v1152_v61, %v1090_v42  ;;  %v1164_v22 = vadd.f32 %v1162_v58, %v1100_v26 }
 0x1cb   :  { %v2501_v54 = vpop.permute.xlu1 %1287  ;;  %v2503_v13 = vpop.permute.xlu0 %1276  ;;  %v1165_v11 = vadd.f32 %v1163_v21, %v1101_v46  ;;  %v2639_v38 = vrot.slane %v2638_v7, %v1880_v4 }
 0x1cf   :  { %v1169_v50 = vpop.permute.xlu1 %1168  ;;  %v1167_v23 = vpop.permute.xlu0 %1166 }
 0x1d0   :  { %v1170_v15 = vsel %vm487_vm6, %v1167_v23, %v1169_v50  ;;  %v1171_v29 = vsel %vm487_vm6, %v1169_v50, %v1167_v23  ;;  %v2640_v23 = vrot.slane %v2638_v7, %v1882_v5 }
 0x1d1   :  { %v1184_v52 = vmul.f32 %v2631_v48, %v1170_v15  ;;  %v1185_v18 = vmul.f32 %v2632_v57, %v1171_v29 }
 0x1d3   :  { %v1255_v41 = vpop.permute.xlu0 %1254  ;;  %v1193_v16 = vmul.f32 %v1191_v36, %v1184_v52  ;;  %v1194_v0 = vmul.f32 %v1191_v36, %v1185_v18  ;;  %v1204_v28 = vmul.f32 %v2635_v14, %v1184_v52  ;;  %v1205_v9 = vmul.f32 %v2635_v14, %v1185_v18  ;;  %v1231_v45 = vpop.permute.xlu1 %1230 }
 0x1d4   :  { %v1215_v62 = vmul.f32 %v2636_v44, %v1184_v52  ;;  %v1216_v3 = vmul.f32 %v2636_v44, %v1185_v18  ;;  %v1226_v39 = vmul.f32 %v2637_v27, %v1184_v52  ;;  %v1227_v8 = vmul.f32 %v2637_v27, %v1185_v18 }
 0x1d5   :  { %v1195_v63 = vadd.f32 %v1193_v16, %v1131_v33  ;;  %v1196_v59 = vadd.f32 %v1194_v0, %v1132_v37  ;;  %v1206_v51 = vadd.f32 %v1204_v28, %v1142_v10  ;;  %v1207_v32 = vadd.f32 %v1205_v9, %v1143_v30 }
 0x1d6   :  { %v1217_v56 = vadd.f32 %v1215_v62, %v1153_v31  ;;  %v1218_v15 = vadd.f32 %v1216_v3, %v1154_v1  ;;  %v1228_v29 = vadd.f32 %v1226_v39, %v1164_v22  ;;  %v1229_v17 = vadd.f32 %v1227_v8, %v1165_v11 }
 0x1d7   :  { %v1233_v36 = vpop.permute.xlu0 %1232 }
 0x1d8   :  { %v1234_v12 = vsel %vm553_vm7, %v1231_v45, %v1233_v36  ;;  %v1235_v40 = vsel %vm553_vm7, %v1233_v36, %v1231_v45 }
 0x1d9   :  { %v1248_v50 = vmul.f32 %v2639_v38, %v1234_v12  ;;  %v1249_v24 = vmul.f32 %v2640_v23, %v1235_v40 }
 0x1db   :  { %v1257_v60 = vmul.f32 %v1255_v41, %v1248_v50  ;;  %v1258_v48 = vmul.f32 %v1255_v41, %v1249_v24  ;;  %v1268_v52 = vmul.f32 %v2487_v19, %v1248_v50  ;;  %v1269_v2 = vmul.f32 %v2487_v19, %v1249_v24 }
 0x1dc   :  { %v1279_v57 = vmul.f32 %v2503_v13, %v1248_v50  ;;  %v1280_v18 = vmul.f32 %v2503_v13, %v1249_v24  ;;  %v1290_v4 = vmul.f32 %v2501_v54, %v1248_v50  ;;  %v1291_v35 = vmul.f32 %v2501_v54, %v1249_v24 }
 0x1dd   :  { %v1259_v5 = vadd.f32 %v1257_v60, %v1195_v63  ;;  %v1260_v42 = vadd.f32 %v1258_v48, %v1196_v59  ;;  %v1270_v26 = vadd.f32 %v1268_v52, %v1206_v51  ;;  %v1271_v46 = vadd.f32 %v1269_v2, %v1207_v32 }
 0x1de   :  { %v1281_v25 = vadd.f32 %v1279_v57, %v1217_v56  ;;  %v1282_v6 = vadd.f32 %v1280_v18, %v1218_v15  ;;  %v1292_v61 = vadd.f32 %v1290_v4, %v1228_v29  ;;  %v1293_v20 = vadd.f32 %v1291_v35, %v1229_v17 }
 0x1df   :  { %v1296_v58 = vrot.slane %v1259_v5, 2  ;;  %v1297_v21 = vrot.slane %v1260_v42, 2  ;;  %v1302_v41 = vrot.slane %v1259_v5, 4  ;;  %v1303_v19 = vrot.slane %v1260_v42, 4 }
 0x1e0   :  { %v1308_v33 = vrot.slane %v1259_v5, 6  ;;  %v1309_v37 = vrot.slane %v1260_v42, 6  ;;  %v1320_v16 = vrot.slane %v1270_v26, 2  ;;  %v1321_v13 = vrot.slane %v1271_v46, 2 }
 0x1e1   :  { %v1300_v0 = vadd.f32 %v1296_v58, %v1259_v5  ;;  %v1301_v10 = vadd.f32 %v1297_v21, %v1260_v42  ;;  %v1326_v30 = vrot.slane %v1270_v26, 4  ;;  %v1327_v54 = vrot.slane %v1271_v46, 4 }
 0x1e2   :  { %v1324_v14 = vadd.f32 %v1320_v16, %v1270_v26  ;;  %v1325_v28 = vadd.f32 %v1321_v13, %v1271_v46  ;;  %v1332_v9 = vrot.slane %v1270_v26, 6  ;;  %v1333_v44 = vrot.slane %v1271_v46, 6 }
 0x1e3   :  { %v1306_v62 = vadd.f32 %v1302_v41, %v1300_v0  ;;  %v1307_v3 = vadd.f32 %v1303_v19, %v1301_v10  ;;  %v1344_v27 = vrot.slane %v1281_v25, 2  ;;  %v1345_v39 = vrot.slane %v1282_v6, 2 }
 0x1e4   :  { %v1330_v8 = vadd.f32 %v1326_v30, %v1324_v14  ;;  %v1331_v31 = vadd.f32 %v1327_v54, %v1325_v28  ;;  %v1350_v1 = vrot.slane %v1281_v25, 4  ;;  %v1351_v22 = vrot.slane %v1282_v6, 4 }
 0x1e5   :  { %v1312_v11 = vadd.f32 %v1308_v33, %v1306_v62  ;;  %v1313_v45 = vadd.f32 %v1309_v37, %v1307_v3  ;;  %v1348_v36 = vadd.f32 %v1344_v27, %v1281_v25  ;;  %v1349_v63 = vadd.f32 %v1345_v39, %v1282_v6 }
 0x1e6   :  { %v1336_v59 = vadd.f32 %v1332_v9, %v1330_v8  ;;  %v1337_v12 = vadd.f32 %v1333_v44, %v1331_v31  ;;  %v1356_v40 = vrot.slane %v1281_v25, 6  ;;  %v1357_v51 = vrot.slane %v1282_v6, 6 }
 0x1e7   :  { %v1354_v32 = vadd.f32 %v1350_v1, %v1348_v36  ;;  %v1355_v7 = vadd.f32 %v1351_v22, %v1349_v63  ;;  %v1368_v38 = vrot.slane %v1292_v61, 2  ;;  %v1369_v50 = vrot.slane %v1293_v20, 2 }
 0x1e8   :  { %v1374_v23 = vrot.slane %v1292_v61, 4  ;;  %v1375_v24 = vrot.slane %v1293_v20, 4  ;;  %v1380_v56 = vrot.slane %v1292_v61, 6  ;;  %v1381_v15 = vrot.slane %v1293_v20, 6 }
 0x1e9   :  { %v1360_v29 = vadd.f32 %v1356_v40, %v1354_v32  ;;  %v1361_v17 = vadd.f32 %v1357_v51, %v1355_v7  ;;  %v1372_v60 = vadd.f32 %v1368_v38, %v1292_v61  ;;  %v1373_v48 = vadd.f32 %v1369_v50, %v1293_v20 }
 0x1ea   :  { %v2641_v52 = vstv %s2351_s16  ;;  %v2643_v4 = vstv %s2353_s17  ;;  %v2645_v25 = vstv %s2355_s27  ;;  %v2647_v20 = vrot.slane %v2430_v49, 2 }
 0x1eb   :  { %v1316_v2 = vadd.f32 %v2641_v52, %v1312_v11  ;;  %v2642_v57 = vmov %v2641_v52  ;;  %v1340_v35 = vadd.f32 %v2643_v4, %v1336_v59  ;;  %v2644_v5 = vmov %v2643_v4 }
 0x1ec   :  { %v1317_v18 = vadd.f32 %v2642_v57, %v1313_v45  ;;  %v1341_v42 = vadd.f32 %v2644_v5, %v1337_v12  ;;  %v1378_v26 = vadd.f32 %v1374_v23, %v1372_v60  ;;  %v1379_v46 = vadd.f32 %v1375_v24, %v1373_v48 }
 0x1ed   :  { %v1364_v6 = vadd.f32 %v2645_v25, %v1360_v29  ;;  %v2646_v58 = vmov %v2645_v25  ;;  %v1390_v41 = vadd.f32 %v2430_v49, %v1316_v2  ;;  %v1400_v19 = vadd.f32 %v2647_v20, %v1340_v35 }
 0x1ee   :  { %v1365_v21 = vadd.f32 %v2646_v58, %v1361_v17  ;;  %v1391_v61 = vadd.f32 %v2436_v53, %v1317_v18  ;;  %v2648_v33 = vrot.slane %v2436_v53, 2  ;;  %v1384_v16 = vadd.f32 %v1380_v56, %v1378_v26 }
 0x1ef   :  { %v1385_v13 = vadd.f32 %v1381_v15, %v1379_v46  ;;  %v1414_v0 = vadd.f32 %v1410_v43, %v1364_v6  ;;  %1392 = vst [vmem:[#allocation8] sm:$0x3] %v1390_v41  ;;  %v1404_v30 = vrot.slane %v1400_v19, 6  ;;  %v2649_v14 = vstv %s2357_s19 }
 0x1f0   :  { %v1401_v37 = vadd.f32 %v2648_v33, %v1341_v42  ;;  %v1415_v10 = vadd.f32 %v1411_v55, %v1365_v21  ;;  %1393 = vst [vmem:[#allocation8 + $0x8] sm:$0x3] %v1391_v61  ;;  %v1388_v28 = vadd.f32 %v2649_v14, %v1384_v16  ;;  %v2650_v9 = vmov %v2649_v14 }
 0x1f1   :  { %v1389_v44 = vadd.f32 %v2650_v9, %v1385_v13  ;;  %v1418_v62 = vrot.slane %v1414_v0, 4  ;;  %1408 = vst [vmem:[#allocation8] sm:$0xc] %v1404_v30 }
 0x1f2   :  { %v1405_v54 = vrot.slane %v1401_v37, 6  ;;  %v1419_v3 = vrot.slane %v1415_v10, 4  ;;  %v1428_v43 = vadd.f32 %v1424_v34, %v1388_v28 }
 0x1f3   :  { %1422 = vst [vmem:[#allocation8] sm:$0x30] %v1418_v62  ;;  %v1429_v55 = vadd.f32 %v1425_v47, %v1389_v44 }
 0x1f4   :  { %1409 = vst [vmem:[#allocation8 + $0x8] sm:$0xc] %v1405_v54  ;;  %1423 = vst [vmem:[#allocation8 + $0x8] sm:$0x30] %v1419_v3  ;;  %v1432_v27 = vrot.slane %v1428_v43, 2 }
 0x1f5   :  { %v1433_v39 = vrot.slane %v1429_v55, 2 }
 0x1f6   :  { %1436 = vst [vmem:[#allocation8] sm:$0xc0] %v1432_v27 }
 0x1f7   :  { %1437 = vst [vmem:[#allocation8 + $0x8] sm:$0xc0] %v1433_v39 }
 0x1f8   :  { %1595 = shalt.err (!%p1592_p0)
}
 0x1f9   :  { %s1596_s8 = scalar_lea.hbm %s2611_s6, 256 }
 0x1fa   :  { %p1597_p1 = scmp.ne.s32.totalorder %s2611_s6, %s1596_s8  ;;  %p1600_p2 = scmp.lt.u32.totalorder %s1596_s8, %s2611_s6 }
 0x1fc   :  { %p1602_p3 = pnand %p1600_p2, %p1597_p1 }
 0x1fe   :  { %1605 = shalt.err (!%p1602_p3)
}
 0x1ff   :  { %1447 = dma.vmem_to_hbm [thread:$0]  %s1445_s30, 256, %s2611_s6, [#allocation4]  }
 0x200   :  { %1610 = dma.done.wait [#allocation4], 256  }
 0x201   :  { %1611 = vsyncadd [#allocation4], 4294967040 }
 0x202   :  { %1451 = vsyncpa [#allocation4], 1 }
 0x203   :  { %1452 = vsyncpa [#allocation5], 1 }
 0x204   :  { %1453 = vsyncpa [#allocation7], 1 }

</bundles_post_ra>
